<compile_context>
chip_gen: v5e
topology: v5e:2x2
jax: 0.10.0
libtpu: 0.0.40
codegen_flags: <defaults>
</compile_context>

<pallas_src>
import functools
import math

import jax
import jax.numpy as jnp
from jax.experimental import pallas as pl
from jax.experimental.pallas import tpu as pltpu

EPS = 1e-5


def _layernorm_f32(x, gamma, beta):
    # x: (S, E); gamma/beta: (1, E).  Statistics always in f32.
    x = x.astype(jnp.float32)
    mean = jnp.mean(x, axis=-1, keepdims=True)
    var = jnp.mean((x - mean) ** 2, axis=-1, keepdims=True)
    inv = jax.lax.rsqrt(var + EPS)
    return (x - mean) * inv * gamma.astype(jnp.float32) + beta.astype(jnp.float32)


def _gelu_exact(x):
    # PyTorch nn.GELU() default: exact erf formulation.
    return 0.5 * x * (1.0 + jax.lax.erf(x * (1.0 / math.sqrt(2.0))))


def encoder_block_kernel(
    x_ref,
    g1_ref, b1_ref,
    wqkv_ref, bqkv_ref,
    wo_ref, bo_ref,
    g2_ref, b2_ref,
    w_fc1_ref, b_fc1_ref,
    w_fc2_ref, b_fc2_ref,
    o_ref,
    q_sc, k_sc, v_sc, ctx_sc,
    *, num_heads: int, head_dim: int,
):
    f32 = jnp.float32
    mxu_dtype = wqkv_ref.dtype
    E = num_heads * head_dim
    inv_scale = f32(1.0 / math.sqrt(head_dim))

    x = x_ref[0].astype(f32)                                  # (S, E)

    # ---- LayerNorm 1 ----
    n1 = _layernorm_f32(x, g1_ref[...], b1_ref[...])

    # ---- fused QKV projection: one (S,E) x (E,3E) MXU pass ----
    qkv = jnp.dot(n1.astype(mxu_dtype), wqkv_ref[...],
                  preferred_element_type=f32) + bqkv_ref[...].astype(f32)

    # ---- stage into head-major (H, S, hd) scratch; fold softmax scale into q ----
    for h in range(num_heads):
        lo = h * head_dim
        hi = lo + head_dim
        q_sc[h] = (qkv[:, lo:hi] * inv_scale).astype(q_sc.dtype)
        k_sc[h] = qkv[:, E + lo:E + hi].astype(k_sc.dtype)
        v_sc[h] = qkv[:, 2 * E + lo:2 * E + hi].astype(v_sc.dtype)

    # ---- batched-head attention (H-stacked MXU matmuls), f32 softmax ----
    qh, kh, vh = q_sc[...], k_sc[...], v_sc[...]
    scores = jnp.einsum("hqd,hkd->hqk", qh, kh, preferred_element_type=f32)
    scores = scores - jnp.max(scores, axis=-1, keepdims=True)
    p = jnp.exp(scores)
    p = p * pl.reciprocal(jnp.sum(p, axis=-1, keepdims=True), approx=True)
    ctx = jnp.einsum("hqk,hkd->hqd", p.astype(mxu_dtype), vh,
                     preferred_element_type=f32)              # (H, S, hd)

    # ---- write heads back to (S, E) scratch in place (no lane-axis concat) ----
    for h in range(num_heads):
        ctx_sc[:, h * head_dim:(h + 1) * head_dim] = ctx[h].astype(ctx_sc.dtype)

    attn = jnp.dot(ctx_sc[...], wo_ref[...],
                   preferred_element_type=f32) + bo_ref[...].astype(f32)
    res1 = attn + x

    # ---- LayerNorm 2 + MLP (Linear -> GELU -> Linear); dropouts are identity ----
    n2 = _layernorm_f32(res1, g2_ref[...], b2_ref[...])
    h1 = jnp.dot(n2.astype(mxu_dtype), w_fc1_ref[...],
                 preferred_element_type=f32) + b_fc1_ref[...].astype(f32)
    h1 = _gelu_exact(h1)
    mlp = jnp.dot(h1.astype(mxu_dtype), w_fc2_ref[...],
                  preferred_element_type=f32) + b_fc2_ref[...].astype(f32)

    o_ref[0] = (mlp + res1).astype(o_ref.dtype)


def transformer_encoder_block(x, params, *, num_heads, mxu_dtype=jnp.float32):
    (g1, be1, wq, bq, wk, bk, wv, bv, wo, bo, g2, be2, w1, b1, w2, b2) = params
    B, S, E = x.shape
    assert E % num_heads == 0
    head_dim = E // num_heads
    f32 = jnp.float32

    # Fuse Q/K/V into one (E, 3E) weight / (1, 3E) bias; matmul weights in mxu_dtype,
    # biases & LN params stay f32 (added after f32 accumulation).
    wqkv = jnp.concatenate([wq, wk, wv], axis=1).astype(mxu_dtype)
    bqkv = jnp.concatenate([bq, bk, bv], axis=1).astype(f32)
    operands = (
        x,
        g1.astype(f32), be1.astype(f32),
        wqkv, bqkv,
        wo.astype(mxu_dtype), bo.astype(f32),
        g2.astype(f32), be2.astype(f32),
        w1.astype(mxu_dtype), b1.astype(f32),
        w2.astype(mxu_dtype), b2.astype(f32),
    )

    def full2d(shape):
        return pl.BlockSpec(shape, lambda b: (0, 0))

    in_specs = [
        pl.BlockSpec((1, S, E), lambda b: (b, 0, 0)),     # x (per-batch tile)
        full2d((1, E)), full2d((1, E)),                   # LN1 gamma/beta
        full2d((E, 3 * E)), full2d((1, 3 * E)),           # fused QKV weight/bias
        full2d((E, E)), full2d((1, E)),                   # out proj
        full2d((1, E)), full2d((1, E)),                   # LN2 gamma/beta
        full2d((E, 4 * E)), full2d((1, 4 * E)),           # fc1
        full2d((4 * E, E)), full2d((1, E)),               # fc2
    ]

    scratch_shapes = [
        pltpu.VMEM((num_heads, S, head_dim), mxu_dtype),  # q (head-major, pre-scaled)
        pltpu.VMEM((num_heads, S, head_dim), mxu_dtype),  # k
        pltpu.VMEM((num_heads, S, head_dim), mxu_dtype),  # v
        pltpu.VMEM((S, E), mxu_dtype),                    # attention context
    ]

    # Explicit VMEM budget sized to the resident set (BlockSpec double-buffers
    # inputs even with constant index_maps, so count params twice).
    def nbytes(a):
        return a.size * jnp.dtype(a.dtype).itemsize
    param_bytes = sum(nbytes(a) for a in operands[1:])
    io_bytes = 4 * S * E * jnp.dtype(x.dtype).itemsize
    scratch_bytes = ((3 * num_heads * S * max(head_dim, 128) + S * E)
                     * jnp.dtype(mxu_dtype).itemsize)
    vmem_limit = int(min(64 * 1024 * 1024,
                         max(32 * 1024 * 1024,
                             2 * param_bytes + io_bytes + scratch_bytes + (4 << 20))))

    kernel = functools.partial(encoder_block_kernel,
                               num_heads=num_heads, head_dim=head_dim)

    return pl.pallas_call(
        kernel,
        out_shape=jax.ShapeDtypeStruct((B, S, E), x.dtype),
        grid_spec=pltpu.PrefetchScalarGridSpec(
            num_scalar_prefetch=0,
            grid=(B,),
            in_specs=in_specs,
            out_specs=pl.BlockSpec((1, S, E), lambda b: (b, 0, 0)),
            scratch_shapes=scratch_shapes,
        ),
        compiler_params=pltpu.CompilerParams(
            dimension_semantics=("parallel",),
            vmem_limit_bytes=vmem_limit,
        ),
    )(*operands)


# ----------------------------- reference (pure JAX) -----------------------------
def reference_block(x, params, *, num_heads):
    (g1, be1, wq, bq, wk, bk, wv, bv, wo, bo, g2, be2, w1, b1, w2, b2) = params
    B, S, E = x.shape
    hd = E // num_heads

    def ln(v, g, b):
        m = jnp.mean(v, axis=-1, keepdims=True)
        va = jnp.mean((v - m) ** 2, axis=-1, keepdims=True)
        return (v - m) / jnp.sqrt(va + EPS) * g + b

    n1 = ln(x, g1, be1)
    q = (n1 @ wq + bq).reshape(B, S, num_heads, hd).transpose(0, 2, 1, 3)
    k = (n1 @ wk + bk).reshape(B, S, num_heads, hd).transpose(0, 2, 1, 3)
    v = (n1 @ wv + bv).reshape(B, S, num_heads, hd).transpose(0, 2, 1, 3)
    s = jnp.einsum("bhqd,bhkd->bhqk", q, k) / jnp.sqrt(jnp.float32(hd))
    p = jax.nn.softmax(s, axis=-1)
    ctx = jnp.einsum("bhqk,bhkd->bhqd", p, v).transpose(0, 2, 1, 3).reshape(B, S, E)
    attn = ctx @ wo + bo
    res1 = attn + x
    n2 = ln(res1, g2, be2)
    h = jax.nn.gelu(n2 @ w1 + b1, approximate=False)
    return h @ w2 + b2 + res1


# ------------------------------------ main ------------------------------------
if __name__ == "__main__":
    # Lane-aligned small config: E multiple of 128, S multiple of 8.
    B, S, E, H = 2, 16, 128, 4
    key = jax.random.PRNGKey(0)
    ks = jax.random.split(key, 16)

    def lin(kw, kb, din, dout):
        # emulate nn.Linear init scale, stored as (in, out) so kernel does x @ W + b
        w = jax.random.uniform(kw, (din, dout), jnp.float32, -1.0, 1.0) / jnp.sqrt(din)
        b = jax.random.uniform(kb, (1, dout), jnp.float32, -1.0, 1.0) / jnp.sqrt(din)
        return w, b

    x = jax.random.normal(ks[0], (B, S, E), jnp.float32)

    g1 = jnp.ones((1, E), jnp.float32)
    be1 = jnp.zeros((1, E), jnp.float32)
    wq, bq = lin(ks[1], ks[2], E, E)
    wk, bk = lin(ks[3], ks[4], E, E)
    wv, bv = lin(ks[5], ks[6], E, E)
    wo, bo = lin(ks[7], ks[8], E, E)
    g2 = jnp.ones((1, E), jnp.float32)
    be2 = jnp.zeros((1, E), jnp.float32)
    w1, b1 = lin(ks[9], ks[10], E, 4 * E)
    w2, b2 = lin(ks[11], ks[12], 4 * E, E)

    params = (g1, be1, wq, bq, wk, bk, wv, bv, wo, bo, g2, be2, w1, b1, w2, b2)

    ref = reference_block(x, params, num_heads=H)

    # f32 MXU operands: matches reference up to the approx softmax reciprocal.
    out_f32 = jax.block_until_ready(
        transformer_encoder_block(x, params, num_heads=H, mxu_dtype=jnp.float32))
    assert out_f32.shape == (B, S, E)
    assert jnp.allclose(out_f32, ref, rtol=1e-2, atol=1e-2), "f32 kernel mismatch"

    # bf16 MXU operands (fast path on v6e/v7x); f32 accumulation & f32 LN/softmax.
    out_bf16 = jax.block_until_ready(
        transformer_encoder_block(x, params, num_heads=H, mxu_dtype=jnp.bfloat16))
    assert out_bf16.shape == (B, S, E)
    assert jnp.allclose(out_bf16, ref, rtol=1e-1, atol=3e-1), "bf16 kernel mismatch"

    print("KERNEL_OK")
</pallas_src>

<mosaic_0001>
module attributes {stable_mosaic.version = 11 : i64} {
  func.func @encoder_block_kernel(%arg0: i32, %arg1: memref<1x16x128xf32, #tpu.memory_space<vmem>>, %arg2: memref<1x128xf32, #tpu.memory_space<vmem>>, %arg3: memref<1x128xf32, #tpu.memory_space<vmem>>, %arg4: memref<128x384xf32, #tpu.memory_space<vmem>>, %arg5: memref<1x384xf32, #tpu.memory_space<vmem>>, %arg6: memref<128x128xf32, #tpu.memory_space<vmem>>, %arg7: memref<1x128xf32, #tpu.memory_space<vmem>>, %arg8: memref<1x128xf32, #tpu.memory_space<vmem>>, %arg9: memref<1x128xf32, #tpu.memory_space<vmem>>, %arg10: memref<128x512xf32, #tpu.memory_space<vmem>>, %arg11: memref<1x512xf32, #tpu.memory_space<vmem>>, %arg12: memref<512x128xf32, #tpu.memory_space<vmem>>, %arg13: memref<1x128xf32, #tpu.memory_space<vmem>>, %arg14: memref<1x16x128xf32, #tpu.memory_space<vmem>>, %arg15: memref<4x16x32xf32, #tpu.memory_space<vmem>>, %arg16: memref<4x16x32xf32, #tpu.memory_space<vmem>>, %arg17: memref<4x16x32xf32, #tpu.memory_space<vmem>>, %arg18: memref<16x128xf32, #tpu.memory_space<vmem>>) attributes {dimension_semantics = [#tpu.dimension_semantics<parallel>], iteration_bounds = array<i64: 2>, scalar_prefetch = 0 : i64, scratch_operands = 4 : i64, tpu.core_type = #tpu.core_type<tc>, window_params = [{transform_indices = @transform_0, window_bounds = array<i64: 1, 16, 128>}, {pipeline_mode = #tpu.pipeline_mode<synchronous>, transform_indices = @transform_1, window_bounds = array<i64: 1, 128>}, {pipeline_mode = #tpu.pipeline_mode<synchronous>, transform_indices = @transform_2, window_bounds = array<i64: 1, 128>}, {pipeline_mode = #tpu.pipeline_mode<synchronous>, transform_indices = @transform_3, window_bounds = array<i64: 128, 384>}, {pipeline_mode = #tpu.pipeline_mode<synchronous>, transform_indices = @transform_4, window_bounds = array<i64: 1, 384>}, {pipeline_mode = #tpu.pipeline_mode<synchronous>, transform_indices = @transform_5, window_bounds = array<i64: 128, 128>}, {pipeline_mode = #tpu.pipeline_mode<synchronous>, transform_indices = @transform_6, window_bounds = array<i64: 1, 128>}, {pipeline_mode = #tpu.pipeline_mode<synchronous>, transform_indices = @transform_7, window_bounds = array<i64: 1, 128>}, {pipeline_mode = #tpu.pipeline_mode<synchronous>, transform_indices = @transform_8, window_bounds = array<i64: 1, 128>}, {pipeline_mode = #tpu.pipeline_mode<synchronous>, transform_indices = @transform_9, window_bounds = array<i64: 128, 512>}, {pipeline_mode = #tpu.pipeline_mode<synchronous>, transform_indices = @transform_10, window_bounds = array<i64: 1, 512>}, {pipeline_mode = #tpu.pipeline_mode<synchronous>, transform_indices = @transform_11, window_bounds = array<i64: 512, 128>}, {pipeline_mode = #tpu.pipeline_mode<synchronous>, transform_indices = @transform_12, window_bounds = array<i64: 1, 128>}, {transform_indices = @transform_13, window_bounds = array<i64: 1, 16, 128>}]} {
    %c0 = arith.constant 0 : index
    %c0_0 = arith.constant 0 : index
    %c0_1 = arith.constant 0 : index
    %0 = vector.load %arg1[%c0, %c0_0, %c0_1] : memref<1x16x128xf32, #tpu.memory_space<vmem>>, vector<1x16x128xf32>
    %1 = vector.shape_cast %0 : vector<1x16x128xf32> to vector<16x128xf32>
    %c0_2 = arith.constant 0 : index
    %c0_3 = arith.constant 0 : index
    %2 = vector.load %arg2[%c0_2, %c0_3] : memref<1x128xf32, #tpu.memory_space<vmem>>, vector<1x128xf32>
    %c0_4 = arith.constant 0 : index
    %c0_5 = arith.constant 0 : index
    %3 = vector.load %arg3[%c0_4, %c0_5] : memref<1x128xf32, #tpu.memory_space<vmem>>, vector<1x128xf32>
    %cst = arith.constant dense<0.000000e+00> : vector<16xf32>
    %4 = vector.multi_reduction <add>, %1, %cst [1] : vector<16x128xf32> to vector<16xf32>
    %5 = vector.shape_cast %4 : vector<16xf32> to vector<16x1xf32>
    %cst_6 = arith.constant 1.280000e+02 : f32
    %6 = vector.broadcast %cst_6 : f32 to vector<16x1xf32>
    %7 = arith.divf %5, %6 : vector<16x1xf32>
    %8 = vector.broadcast %7 : vector<16x1xf32> to vector<16x128xf32>
    %9 = arith.subf %1, %8 : vector<16x128xf32>
    %10 = arith.mulf %9, %9 : vector<16x128xf32>
    %cst_7 = arith.constant dense<0.000000e+00> : vector<16xf32>
    %11 = vector.multi_reduction <add>, %10, %cst_7 [1] : vector<16x128xf32> to vector<16xf32>
    %12 = vector.shape_cast %11 : vector<16xf32> to vector<16x1xf32>
    %cst_8 = arith.constant 1.280000e+02 : f32
    %13 = vector.broadcast %cst_8 : f32 to vector<16x1xf32>
    %14 = arith.divf %12, %13 : vector<16x1xf32>
    %cst_9 = arith.constant 9.99999974E-6 : f32
    %15 = vector.broadcast %cst_9 : f32 to vector<16x1xf32>
    %16 = arith.addf %14, %15 : vector<16x1xf32>
    %17 = math.rsqrt %16 : vector<16x1xf32>
    %18 = vector.broadcast %7 : vector<16x1xf32> to vector<16x128xf32>
    %19 = arith.subf %1, %18 : vector<16x128xf32>
    %20 = vector.broadcast %17 : vector<16x1xf32> to vector<16x128xf32>
    %21 = arith.mulf %19, %20 : vector<16x128xf32>
    %22 = vector.broadcast %2 : vector<1x128xf32> to vector<16x128xf32>
    %23 = arith.mulf %21, %22 : vector<16x128xf32>
    %24 = vector.broadcast %3 : vector<1x128xf32> to vector<16x128xf32>
    %25 = arith.addf %23, %24 : vector<16x128xf32>
    %c0_10 = arith.constant 0 : index
    %c0_11 = arith.constant 0 : index
    %26 = vector.load %arg4[%c0_10, %c0_11] : memref<128x384xf32, #tpu.memory_space<vmem>>, vector<128x384xf32>
    %cst_12 = arith.constant dense<0.000000e+00> : vector<16x384xf32>
    %27 = tpu.matmul %25, %26, %cst_12 {dimension_numbers = #tpu.dot_dimension_numbers<[1], [0], [0], [1], [0, 0, 1, 1], [], []>} : vector<16x128xf32>, vector<128x384xf32>, vector<16x384xf32> -> vector<16x384xf32>
    %c0_13 = arith.constant 0 : index
    %c0_14 = arith.constant 0 : index
    %28 = vector.load %arg5[%c0_13, %c0_14] : memref<1x384xf32, #tpu.memory_space<vmem>>, vector<1x384xf32>
    %29 = vector.broadcast %28 : vector<1x384xf32> to vector<16x384xf32>
    %30 = arith.addf %27, %29 : vector<16x384xf32>
    %31 = vector.extract_strided_slice %30 {offsets = [0, 0], sizes = [16, 32], strides = [1, 1]} : vector<16x384xf32> to vector<16x32xf32>
    %cst_15 = arith.constant 0.176776692 : f32
    %32 = vector.broadcast %cst_15 : f32 to vector<16x32xf32>
    %33 = arith.mulf %31, %32 : vector<16x32xf32>
    %c0_16 = arith.constant 0 : index
    %c0_17 = arith.constant 0 : index
    %c0_18 = arith.constant 0 : index
    %34 = vector.load %arg15[%c0_16, %c0_17, %c0_18] : memref<4x16x32xf32, #tpu.memory_space<vmem>>, vector<1x16x32xf32>
    %35 = vector.shape_cast %34 : vector<1x16x32xf32> to vector<16x32xf32>
    %36 = vector.shape_cast %33 : vector<16x32xf32> to vector<1x16x32xf32>
    tpu.vector_store %arg15[%c0_16, %c0_17, %c0_18], %36 {strides = array<i32>} : memref<4x16x32xf32, #tpu.memory_space<vmem>>, vector<1x16x32xf32>,
    %37 = vector.extract_strided_slice %30 {offsets = [0, 128], sizes = [16, 32], strides = [1, 1]} : vector<16x384xf32> to vector<16x32xf32>
    %c0_19 = arith.constant 0 : index
    %c0_20 = arith.constant 0 : index
    %c0_21 = arith.constant 0 : index
    %38 = vector.load %arg16[%c0_19, %c0_20, %c0_21] : memref<4x16x32xf32, #tpu.memory_space<vmem>>, vector<1x16x32xf32>
    %39 = vector.shape_cast %38 : vector<1x16x32xf32> to vector<16x32xf32>
    %40 = vector.shape_cast %37 : vector<16x32xf32> to vector<1x16x32xf32>
    tpu.vector_store %arg16[%c0_19, %c0_20, %c0_21], %40 {strides = array<i32>} : memref<4x16x32xf32, #tpu.memory_space<vmem>>, vector<1x16x32xf32>,
    %41 = vector.extract_strided_slice %30 {offsets = [0, 256], sizes = [16, 32], strides = [1, 1]} : vector<16x384xf32> to vector<16x32xf32>
    %c0_22 = arith.constant 0 : index
    %c0_23 = arith.constant 0 : index
    %c0_24 = arith.constant 0 : index
    %42 = vector.load %arg17[%c0_22, %c0_23, %c0_24] : memref<4x16x32xf32, #tpu.memory_space<vmem>>, vector<1x16x32xf32>
    %43 = vector.shape_cast %42 : vector<1x16x32xf32> to vector<16x32xf32>
    %44 = vector.shape_cast %41 : vector<16x32xf32> to vector<1x16x32xf32>
    tpu.vector_store %arg17[%c0_22, %c0_23, %c0_24], %44 {strides = array<i32>} : memref<4x16x32xf32, #tpu.memory_space<vmem>>, vector<1x16x32xf32>,
    %45 = vector.extract_strided_slice %30 {offsets = [0, 32], sizes = [16, 32], strides = [1, 1]} : vector<16x384xf32> to vector<16x32xf32>
    %cst_25 = arith.constant 0.176776692 : f32
    %46 = vector.broadcast %cst_25 : f32 to vector<16x32xf32>
    %47 = arith.mulf %45, %46 : vector<16x32xf32>
    %c1 = arith.constant 1 : index
    %c0_26 = arith.constant 0 : index
    %c0_27 = arith.constant 0 : index
    %48 = vector.load %arg15[%c1, %c0_26, %c0_27] : memref<4x16x32xf32, #tpu.memory_space<vmem>>, vector<1x16x32xf32>
    %49 = vector.shape_cast %48 : vector<1x16x32xf32> to vector<16x32xf32>
    %50 = vector.shape_cast %47 : vector<16x32xf32> to vector<1x16x32xf32>
    tpu.vector_store %arg15[%c1, %c0_26, %c0_27], %50 {strides = array<i32>} : memref<4x16x32xf32, #tpu.memory_space<vmem>>, vector<1x16x32xf32>,
    %51 = vector.extract_strided_slice %30 {offsets = [0, 160], sizes = [16, 32], strides = [1, 1]} : vector<16x384xf32> to vector<16x32xf32>
    %c1_28 = arith.constant 1 : index
    %c0_29 = arith.constant 0 : index
    %c0_30 = arith.constant 0 : index
    %52 = vector.load %arg16[%c1_28, %c0_29, %c0_30] : memref<4x16x32xf32, #tpu.memory_space<vmem>>, vector<1x16x32xf32>
    %53 = vector.shape_cast %52 : vector<1x16x32xf32> to vector<16x32xf32>
    %54 = vector.shape_cast %51 : vector<16x32xf32> to vector<1x16x32xf32>
    tpu.vector_store %arg16[%c1_28, %c0_29, %c0_30], %54 {strides = array<i32>} : memref<4x16x32xf32, #tpu.memory_space<vmem>>, vector<1x16x32xf32>,
    %55 = vector.extract_strided_slice %30 {offsets = [0, 288], sizes = [16, 32], strides = [1, 1]} : vector<16x384xf32> to vector<16x32xf32>
    %c1_31 = arith.constant 1 : index
    %c0_32 = arith.constant 0 : index
    %c0_33 = arith.constant 0 : index
    %56 = vector.load %arg17[%c1_31, %c0_32, %c0_33] : memref<4x16x32xf32, #tpu.memory_space<vmem>>, vector<1x16x32xf32>
    %57 = vector.shape_cast %56 : vector<1x16x32xf32> to vector<16x32xf32>
    %58 = vector.shape_cast %55 : vector<16x32xf32> to vector<1x16x32xf32>
    tpu.vector_store %arg17[%c1_31, %c0_32, %c0_33], %58 {strides = array<i32>} : memref<4x16x32xf32, #tpu.memory_space<vmem>>, vector<1x16x32xf32>,
    %59 = vector.extract_strided_slice %30 {offsets = [0, 64], sizes = [16, 32], strides = [1, 1]} : vector<16x384xf32> to vector<16x32xf32>
    %cst_34 = arith.constant 0.176776692 : f32
    %60 = vector.broadcast %cst_34 : f32 to vector<16x32xf32>
    %61 = arith.mulf %59, %60 : vector<16x32xf32>
    %c2 = arith.constant 2 : index
    %c0_35 = arith.constant 0 : index
    %c0_36 = arith.constant 0 : index
    %62 = vector.load %arg15[%c2, %c0_35, %c0_36] : memref<4x16x32xf32, #tpu.memory_space<vmem>>, vector<1x16x32xf32>
    %63 = vector.shape_cast %62 : vector<1x16x32xf32> to vector<16x32xf32>
    %64 = vector.shape_cast %61 : vector<16x32xf32> to vector<1x16x32xf32>
    tpu.vector_store %arg15[%c2, %c0_35, %c0_36], %64 {strides = array<i32>} : memref<4x16x32xf32, #tpu.memory_space<vmem>>, vector<1x16x32xf32>,
    %65 = vector.extract_strided_slice %30 {offsets = [0, 192], sizes = [16, 32], strides = [1, 1]} : vector<16x384xf32> to vector<16x32xf32>
    %c2_37 = arith.constant 2 : index
    %c0_38 = arith.constant 0 : index
    %c0_39 = arith.constant 0 : index
    %66 = vector.load %arg16[%c2_37, %c0_38, %c0_39] : memref<4x16x32xf32, #tpu.memory_space<vmem>>, vector<1x16x32xf32>
    %67 = vector.shape_cast %66 : vector<1x16x32xf32> to vector<16x32xf32>
    %68 = vector.shape_cast %65 : vector<16x32xf32> to vector<1x16x32xf32>
    tpu.vector_store %arg16[%c2_37, %c0_38, %c0_39], %68 {strides = array<i32>} : memref<4x16x32xf32, #tpu.memory_space<vmem>>, vector<1x16x32xf32>,
    %69 = vector.extract_strided_slice %30 {offsets = [0, 320], sizes = [16, 32], strides = [1, 1]} : vector<16x384xf32> to vector<16x32xf32>
    %c2_40 = arith.constant 2 : index
    %c0_41 = arith.constant 0 : index
    %c0_42 = arith.constant 0 : index
    %70 = vector.load %arg17[%c2_40, %c0_41, %c0_42] : memref<4x16x32xf32, #tpu.memory_space<vmem>>, vector<1x16x32xf32>
    %71 = vector.shape_cast %70 : vector<1x16x32xf32> to vector<16x32xf32>
    %72 = vector.shape_cast %69 : vector<16x32xf32> to vector<1x16x32xf32>
    tpu.vector_store %arg17[%c2_40, %c0_41, %c0_42], %72 {strides = array<i32>} : memref<4x16x32xf32, #tpu.memory_space<vmem>>, vector<1x16x32xf32>,
    %73 = vector.extract_strided_slice %30 {offsets = [0, 96], sizes = [16, 32], strides = [1, 1]} : vector<16x384xf32> to vector<16x32xf32>
    %cst_43 = arith.constant 0.176776692 : f32
    %74 = vector.broadcast %cst_43 : f32 to vector<16x32xf32>
    %75 = arith.mulf %73, %74 : vector<16x32xf32>
    %c3 = arith.constant 3 : index
    %c0_44 = arith.constant 0 : index
    %c0_45 = arith.constant 0 : index
    %76 = vector.load %arg15[%c3, %c0_44, %c0_45] : memref<4x16x32xf32, #tpu.memory_space<vmem>>, vector<1x16x32xf32>
    %77 = vector.shape_cast %76 : vector<1x16x32xf32> to vector<16x32xf32>
    %78 = vector.shape_cast %75 : vector<16x32xf32> to vector<1x16x32xf32>
    tpu.vector_store %arg15[%c3, %c0_44, %c0_45], %78 {strides = array<i32>} : memref<4x16x32xf32, #tpu.memory_space<vmem>>, vector<1x16x32xf32>,
    %79 = vector.extract_strided_slice %30 {offsets = [0, 224], sizes = [16, 32], strides = [1, 1]} : vector<16x384xf32> to vector<16x32xf32>
    %c3_46 = arith.constant 3 : index
    %c0_47 = arith.constant 0 : index
    %c0_48 = arith.constant 0 : index
    %80 = vector.load %arg16[%c3_46, %c0_47, %c0_48] : memref<4x16x32xf32, #tpu.memory_space<vmem>>, vector<1x16x32xf32>
    %81 = vector.shape_cast %80 : vector<1x16x32xf32> to vector<16x32xf32>
    %82 = vector.shape_cast %79 : vector<16x32xf32> to vector<1x16x32xf32>
    tpu.vector_store %arg16[%c3_46, %c0_47, %c0_48], %82 {strides = array<i32>} : memref<4x16x32xf32, #tpu.memory_space<vmem>>, vector<1x16x32xf32>,
    %83 = vector.extract_strided_slice %30 {offsets = [0, 352], sizes = [16, 32], strides = [1, 1]} : vector<16x384xf32> to vector<16x32xf32>
    %c3_49 = arith.constant 3 : index
    %c0_50 = arith.constant 0 : index
    %c0_51 = arith.constant 0 : index
    %84 = vector.load %arg17[%c3_49, %c0_50, %c0_51] : memref<4x16x32xf32, #tpu.memory_space<vmem>>, vector<1x16x32xf32>
    %85 = vector.shape_cast %84 : vector<1x16x32xf32> to vector<16x32xf32>
    %86 = vector.shape_cast %83 : vector<16x32xf32> to vector<1x16x32xf32>
    tpu.vector_store %arg17[%c3_49, %c0_50, %c0_51], %86 {strides = array<i32>} : memref<4x16x32xf32, #tpu.memory_space<vmem>>, vector<1x16x32xf32>,
    %c0_52 = arith.constant 0 : index
    %c0_53 = arith.constant 0 : index
    %c0_54 = arith.constant 0 : index
    %87 = vector.load %arg15[%c0_52, %c0_53, %c0_54] : memref<4x16x32xf32, #tpu.memory_space<vmem>>, vector<4x16x32xf32>
    %c0_55 = arith.constant 0 : index
    %c0_56 = arith.constant 0 : index
    %c0_57 = arith.constant 0 : index
    %88 = vector.load %arg16[%c0_55, %c0_56, %c0_57] : memref<4x16x32xf32, #tpu.memory_space<vmem>>, vector<4x16x32xf32>
    %c0_58 = arith.constant 0 : index
    %c0_59 = arith.constant 0 : index
    %c0_60 = arith.constant 0 : index
    %89 = vector.load %arg17[%c0_58, %c0_59, %c0_60] : memref<4x16x32xf32, #tpu.memory_space<vmem>>, vector<4x16x32xf32>
    "tpu.trace_start"() <{level = 10 : i32, message = "hqd,hkd->hqk"}> : () -> ()
    %cst_61 = arith.constant dense<0.000000e+00> : vector<4x16x16xf32>
    %90 = tpu.matmul %87, %88, %cst_61 {dimension_numbers = #tpu.dot_dimension_numbers<[2], [2], [1], [1], [0, 0, 0, 1, 1, 1], [0], [0]>} : vector<4x16x32xf32>, vector<4x16x32xf32>, vector<4x16x16xf32> -> vector<4x16x16xf32>
    "tpu.trace_stop"() : () -> ()
    %cst_62 = arith.constant dense<0xFF800000> : vector<4x16xf32>
    %91 = vector.multi_reduction <maximumf>, %90, %cst_62 [2] : vector<4x16x16xf32> to vector<4x16xf32>
    %92 = vector.shape_cast %91 : vector<4x16xf32> to vector<4x16x1xf32>
    %93 = vector.broadcast %92 : vector<4x16x1xf32> to vector<4x16x16xf32>
    %94 = arith.subf %90, %93 : vector<4x16x16xf32>
    %95 = math.exp %94 : vector<4x16x16xf32>
    %cst_63 = arith.constant dense<0.000000e+00> : vector<4x16xf32>
    %96 = vector.multi_reduction <add>, %95, %cst_63 [2] : vector<4x16x16xf32> to vector<4x16xf32>
    %97 = vector.shape_cast %96 : vector<4x16xf32> to vector<4x16x1xf32>
    %98 = tpu.reciprocal %97 {approx = true} : vector<4x16x1xf32> -> vector<4x16x1xf32>
    %99 = vector.broadcast %98 : vector<4x16x1xf32> to vector<4x16x16xf32>
    %100 = arith.mulf %95, %99 : vector<4x16x16xf32>
    "tpu.trace_start"() <{level = 10 : i32, message = "hqk,hkd->hqd"}> : () -> ()
    %cst_64 = arith.constant dense<0.000000e+00> : vector<4x16x32xf32>
    %101 = tpu.matmul %100, %89, %cst_64 {dimension_numbers = #tpu.dot_dimension_numbers<[2], [1], [1], [2], [0, 0, 0, 1, 1, 2], [0], [0]>} : vector<4x16x16xf32>, vector<4x16x32xf32>, vector<4x16x32xf32> -> vector<4x16x32xf32>
    "tpu.trace_stop"() : () -> ()
    %102 = vector.extract_strided_slice %101 {offsets = [0, 0, 0], sizes = [1, 16, 32], strides = [1, 1, 1]} : vector<4x16x32xf32> to vector<1x16x32xf32>
    %103 = vector.shape_cast %102 : vector<1x16x32xf32> to vector<16x32xf32>
    %c0_65 = arith.constant 0 : index
    %c0_66 = arith.constant 0 : index
    %104 = vector.load %arg18[%c0_65, %c0_66] : memref<16x128xf32, #tpu.memory_space<vmem>>, vector<16x32xf32>
    tpu.vector_store %arg18[%c0_65, %c0_66], %103 {strides = array<i32>} : memref<16x128xf32, #tpu.memory_space<vmem>>, vector<16x32xf32>,
    %105 = vector.extract_strided_slice %101 {offsets = [1, 0, 0], sizes = [1, 16, 32], strides = [1, 1, 1]} : vector<4x16x32xf32> to vector<1x16x32xf32>
    %106 = vector.shape_cast %105 : vector<1x16x32xf32> to vector<16x32xf32>
    %c0_67 = arith.constant 0 : index
    %c32 = arith.constant 32 : index
    %107 = vector.load %arg18[%c0_67, %c32] : memref<16x128xf32, #tpu.memory_space<vmem>>, vector<16x32xf32>
    tpu.vector_store %arg18[%c0_67, %c32], %106 {strides = array<i32>} : memref<16x128xf32, #tpu.memory_space<vmem>>, vector<16x32xf32>,
    %108 = vector.extract_strided_slice %101 {offsets = [2, 0, 0], sizes = [1, 16, 32], strides = [1, 1, 1]} : vector<4x16x32xf32> to vector<1x16x32xf32>
    %109 = vector.shape_cast %108 : vector<1x16x32xf32> to vector<16x32xf32>
    %c0_68 = arith.constant 0 : index
    %c64 = arith.constant 64 : index
    %110 = vector.load %arg18[%c0_68, %c64] : memref<16x128xf32, #tpu.memory_space<vmem>>, vector<16x32xf32>
    tpu.vector_store %arg18[%c0_68, %c64], %109 {strides = array<i32>} : memref<16x128xf32, #tpu.memory_space<vmem>>, vector<16x32xf32>,
    %111 = vector.extract_strided_slice %101 {offsets = [3, 0, 0], sizes = [1, 16, 32], strides = [1, 1, 1]} : vector<4x16x32xf32> to vector<1x16x32xf32>
    %112 = vector.shape_cast %111 : vector<1x16x32xf32> to vector<16x32xf32>
    %c0_69 = arith.constant 0 : index
    %c96 = arith.constant 96 : index
    %113 = vector.load %arg18[%c0_69, %c96] : memref<16x128xf32, #tpu.memory_space<vmem>>, vector<16x32xf32>
    tpu.vector_store %arg18[%c0_69, %c96], %112 {strides = array<i32>} : memref<16x128xf32, #tpu.memory_space<vmem>>, vector<16x32xf32>,
    %c0_70 = arith.constant 0 : index
    %c0_71 = arith.constant 0 : index
    %114 = vector.load %arg18[%c0_70, %c0_71] : memref<16x128xf32, #tpu.memory_space<vmem>>, vector<16x128xf32>
    %c0_72 = arith.constant 0 : index
    %c0_73 = arith.constant 0 : index
    %115 = vector.load %arg6[%c0_72, %c0_73] : memref<128x128xf32, #tpu.memory_space<vmem>>, vector<128x128xf32>
    %cst_74 = arith.constant dense<0.000000e+00> : vector<16x128xf32>
    %116 = tpu.matmul %114, %115, %cst_74 {dimension_numbers = #tpu.dot_dimension_numbers<[1], [0], [0], [1], [0, 0, 1, 1], [], []>} : vector<16x128xf32>, vector<128x128xf32>, vector<16x128xf32> -> vector<16x128xf32>
    %c0_75 = arith.constant 0 : index
    %c0_76 = arith.constant 0 : index
    %117 = vector.load %arg7[%c0_75, %c0_76] : memref<1x128xf32, #tpu.memory_space<vmem>>, vector<1x128xf32>
    %118 = vector.broadcast %117 : vector<1x128xf32> to vector<16x128xf32>
    %119 = arith.addf %116, %118 : vector<16x128xf32>
    %120 = arith.addf %119, %1 : vector<16x128xf32>
    %c0_77 = arith.constant 0 : index
    %c0_78 = arith.constant 0 : index
    %121 = vector.load %arg8[%c0_77, %c0_78] : memref<1x128xf32, #tpu.memory_space<vmem>>, vector<1x128xf32>
    %c0_79 = arith.constant 0 : index
    %c0_80 = arith.constant 0 : index
    %122 = vector.load %arg9[%c0_79, %c0_80] : memref<1x128xf32, #tpu.memory_space<vmem>>, vector<1x128xf32>
    %cst_81 = arith.constant dense<0.000000e+00> : vector<16xf32>
    %123 = vector.multi_reduction <add>, %120, %cst_81 [1] : vector<16x128xf32> to vector<16xf32>
    %124 = vector.shape_cast %123 : vector<16xf32> to vector<16x1xf32>
    %cst_82 = arith.constant 1.280000e+02 : f32
    %125 = vector.broadcast %cst_82 : f32 to vector<16x1xf32>
    %126 = arith.divf %124, %125 : vector<16x1xf32>
    %127 = vector.broadcast %126 : vector<16x1xf32> to vector<16x128xf32>
    %128 = arith.subf %120, %127 : vector<16x128xf32>
    %129 = arith.mulf %128, %128 : vector<16x128xf32>
    %cst_83 = arith.constant dense<0.000000e+00> : vector<16xf32>
    %130 = vector.multi_reduction <add>, %129, %cst_83 [1] : vector<16x128xf32> to vector<16xf32>
    %131 = vector.shape_cast %130 : vector<16xf32> to vector<16x1xf32>
    %cst_84 = arith.constant 1.280000e+02 : f32
    %132 = vector.broadcast %cst_84 : f32 to vector<16x1xf32>
    %133 = arith.divf %131, %132 : vector<16x1xf32>
    %cst_85 = arith.constant 9.99999974E-6 : f32
    %134 = vector.broadcast %cst_85 : f32 to vector<16x1xf32>
    %135 = arith.addf %133, %134 : vector<16x1xf32>
    %136 = math.rsqrt %135 : vector<16x1xf32>
    %137 = vector.broadcast %126 : vector<16x1xf32> to vector<16x128xf32>
    %138 = arith.subf %120, %137 : vector<16x128xf32>
    %139 = vector.broadcast %136 : vector<16x1xf32> to vector<16x128xf32>
    %140 = arith.mulf %138, %139 : vector<16x128xf32>
    %141 = vector.broadcast %121 : vector<1x128xf32> to vector<16x128xf32>
    %142 = arith.mulf %140, %141 : vector<16x128xf32>
    %143 = vector.broadcast %122 : vector<1x128xf32> to vector<16x128xf32>
    %144 = arith.addf %142, %143 : vector<16x128xf32>
    %c0_86 = arith.constant 0 : index
    %c0_87 = arith.constant 0 : index
    %145 = vector.load %arg10[%c0_86, %c0_87] : memref<128x512xf32, #tpu.memory_space<vmem>>, vector<128x512xf32>
    %cst_88 = arith.constant dense<0.000000e+00> : vector<16x512xf32>
    %146 = tpu.matmul %144, %145, %cst_88 {dimension_numbers = #tpu.dot_dimension_numbers<[1], [0], [0], [1], [0, 0, 1, 1], [], []>} : vector<16x128xf32>, vector<128x512xf32>, vector<16x512xf32> -> vector<16x512xf32>
    %c0_89 = arith.constant 0 : index
    %c0_90 = arith.constant 0 : index
    %147 = vector.load %arg11[%c0_89, %c0_90] : memref<1x512xf32, #tpu.memory_space<vmem>>, vector<1x512xf32>
    %148 = vector.broadcast %147 : vector<1x512xf32> to vector<16x512xf32>
    %149 = arith.addf %146, %148 : vector<16x512xf32>
    %cst_91 = arith.constant 5.000000e-01 : f32
    %150 = vector.broadcast %cst_91 : f32 to vector<16x512xf32>
    %151 = arith.mulf %150, %149 : vector<16x512xf32>
    %cst_92 = arith.constant 0.707106769 : f32
    %152 = vector.broadcast %cst_92 : f32 to vector<16x512xf32>
    %153 = arith.mulf %149, %152 : vector<16x512xf32>
    %154 = math.erf %153 : vector<16x512xf32>
    %cst_93 = arith.constant 1.000000e+00 : f32
    %155 = vector.broadcast %cst_93 : f32 to vector<16x512xf32>
    %156 = arith.addf %155, %154 : vector<16x512xf32>
    %157 = arith.mulf %151, %156 : vector<16x512xf32>
    %c0_94 = arith.constant 0 : index
    %c0_95 = arith.constant 0 : index
    %158 = vector.load %arg12[%c0_94, %c0_95] : memref<512x128xf32, #tpu.memory_space<vmem>>, vector<512x128xf32>
    %cst_96 = arith.constant dense<0.000000e+00> : vector<16x128xf32>
    %159 = tpu.matmul %157, %158, %cst_96 {dimension_numbers = #tpu.dot_dimension_numbers<[1], [0], [0], [1], [0, 0, 1, 1], [], []>} : vector<16x512xf32>, vector<512x128xf32>, vector<16x128xf32> -> vector<16x128xf32>
    %c0_97 = arith.constant 0 : index
    %c0_98 = arith.constant 0 : index
    %160 = vector.load %arg13[%c0_97, %c0_98] : memref<1x128xf32, #tpu.memory_space<vmem>>, vector<1x128xf32>
    %161 = vector.broadcast %160 : vector<1x128xf32> to vector<16x128xf32>
    %162 = arith.addf %159, %161 : vector<16x128xf32>
    %163 = arith.addf %162, %120 : vector<16x128xf32>
    %c0_99 = arith.constant 0 : index
    %c0_100 = arith.constant 0 : index
    %c0_101 = arith.constant 0 : index
    %164 = vector.load %arg14[%c0_99, %c0_100, %c0_101] : memref<1x16x128xf32, #tpu.memory_space<vmem>>, vector<1x16x128xf32>
    %165 = vector.shape_cast %164 : vector<1x16x128xf32> to vector<16x128xf32>
    %166 = vector.shape_cast %163 : vector<16x128xf32> to vector<1x16x128xf32>
    tpu.vector_store %arg14[%c0_99, %c0_100, %c0_101], %166 {strides = array<i32>} : memref<1x16x128xf32, #tpu.memory_space<vmem>>, vector<1x16x128xf32>,
    return
  }
  func.func @transform_0(%arg0: i32) -> (i32, i32, i32) {
    %c0_i32 = arith.constant 0 : i32
    %c0_i32_0 = arith.constant 0 : i32
    %c0_i32_1 = arith.constant 0 : i32
    return %arg0, %c0_i32, %c0_i32_0 : i32, i32, i32
  }
  func.func @transform_1(%arg0: i32) -> (i32, i32) {
    %c0_i32 = arith.constant 0 : i32
    %c0_i32_0 = arith.constant 0 : i32
    %c0_i32_1 = arith.constant 0 : i32
    return %c0_i32, %c0_i32_0 : i32, i32
  }
  func.func @transform_2(%arg0: i32) -> (i32, i32) {
    %c0_i32 = arith.constant 0 : i32
    %c0_i32_0 = arith.constant 0 : i32
    %c0_i32_1 = arith.constant 0 : i32
    return %c0_i32, %c0_i32_0 : i32, i32
  }
  func.func @transform_3(%arg0: i32) -> (i32, i32) {
    %c0_i32 = arith.constant 0 : i32
    %c0_i32_0 = arith.constant 0 : i32
    %c0_i32_1 = arith.constant 0 : i32
    return %c0_i32, %c0_i32_0 : i32, i32
  }
  func.func @transform_4(%arg0: i32) -> (i32, i32) {
    %c0_i32 = arith.constant 0 : i32
    %c0_i32_0 = arith.constant 0 : i32
    %c0_i32_1 = arith.constant 0 : i32
    return %c0_i32, %c0_i32_0 : i32, i32
  }
  func.func @transform_5(%arg0: i32) -> (i32, i32) {
    %c0_i32 = arith.constant 0 : i32
    %c0_i32_0 = arith.constant 0 : i32
    %c0_i32_1 = arith.constant 0 : i32
    return %c0_i32, %c0_i32_0 : i32, i32
  }
  func.func @transform_6(%arg0: i32) -> (i32, i32) {
    %c0_i32 = arith.constant 0 : i32
    %c0_i32_0 = arith.constant 0 : i32
    %c0_i32_1 = arith.constant 0 : i32
    return %c0_i32, %c0_i32_0 : i32, i32
  }
  func.func @transform_7(%arg0: i32) -> (i32, i32) {
    %c0_i32 = arith.constant 0 : i32
    %c0_i32_0 = arith.constant 0 : i32
    %c0_i32_1 = arith.constant 0 : i32
    return %c0_i32, %c0_i32_0 : i32, i32
  }
  func.func @transform_8(%arg0: i32) -> (i32, i32) {
    %c0_i32 = arith.constant 0 : i32
    %c0_i32_0 = arith.constant 0 : i32
    %c0_i32_1 = arith.constant 0 : i32
    return %c0_i32, %c0_i32_0 : i32, i32
  }
  func.func @transform_9(%arg0: i32) -> (i32, i32) {
    %c0_i32 = arith.constant 0 : i32
    %c0_i32_0 = arith.constant 0 : i32
    %c0_i32_1 = arith.constant 0 : i32
    return %c0_i32, %c0_i32_0 : i32, i32
  }
  func.func @transform_10(%arg0: i32) -> (i32, i32) {
    %c0_i32 = arith.constant 0 : i32
    %c0_i32_0 = arith.constant 0 : i32
    %c0_i32_1 = arith.constant 0 : i32
    return %c0_i32, %c0_i32_0 : i32, i32
  }
  func.func @transform_11(%arg0: i32) -> (i32, i32) {
    %c0_i32 = arith.constant 0 : i32
    %c0_i32_0 = arith.constant 0 : i32
    %c0_i32_1 = arith.constant 0 : i32
    return %c0_i32, %c0_i32_0 : i32, i32
  }
  func.func @transform_12(%arg0: i32) -> (i32, i32) {
    %c0_i32 = arith.constant 0 : i32
    %c0_i32_0 = arith.constant 0 : i32
    %c0_i32_1 = arith.constant 0 : i32
    return %c0_i32, %c0_i32_0 : i32, i32
  }
  func.func @transform_13(%arg0: i32) -> (i32, i32, i32) {
    %c0_i32 = arith.constant 0 : i32
    %c0_i32_0 = arith.constant 0 : i32
    %c0_i32_1 = arith.constant 0 : i32
    return %arg0, %c0_i32, %c0_i32_0 : i32, i32, i32
  }
}

</mosaic_0001>

<bundles_post_ra>
// kernel: tpu_custom_call.1
= control target key start
LH: loop header
LB: loop body
LE: loop exit
PB: predicated region body
PF: predicated region fallthrough
CT: control target
= control target key end

     0   :  { %s3625_s0 = inlined_call_operand.hbm [shape: f32[2,16,128], index: 0, kind: input, shape index: {}]   ;;  %s3626_s1 = inlined_call_operand.hbm [shape: f32[1,128], index: 1, kind: input, shape index: {}]   ;;  %s3627_s2 = inlined_call_operand.hbm [shape: f32[1,128], index: 2, kind: input, shape index: {}]   ;;  %s3628_s3 = inlined_call_operand.hbm [shape: f32[128,384], index: 3, kind: input, shape index: {}]   ;;  %s3629_s4 = inlined_call_operand.vmem [shape: f32[1,384], index: 4, kind: input, shape index: {}]   ;;  %s3630_s5 = inlined_call_operand.hbm [shape: f32[128,128], index: 5, kind: input, shape index: {}]   ;;  %s3631_s6 = inlined_call_operand.hbm [shape: f32[1,128], index: 6, kind: input, shape index: {}]   ;;  %s3632_s7 = inlined_call_operand.hbm [shape: f32[1,128], index: 7, kind: input, shape index: {}]   ;;  %s3633_s8 = inlined_call_operand.hbm [shape: f32[1,128], index: 8, kind: input, shape index: {}]   ;;  %s3634_s9 = inlined_call_operand.hbm [shape: f32[128,512], index: 9, kind: input, shape index: {}]   ;;  %s3635_s10 = inlined_call_operand.vmem [shape: f32[1,512], index: 10, kind: input, shape index: {}]   ;;  %s3636_s11 = inlined_call_operand.hbm [shape: f32[512,128], index: 11, kind: input, shape index: {}]   ;;  %s3637_s12 = inlined_call_operand.vmem [shape: f32[1,128], index: 12, kind: input, shape index: {}]   ;;  %s3638_s13 = inlined_call_operand.hbm [shape: f32[2,16,128], index: 13, kind: output, shape index: {}]  }
   0x1   :  { %3642 = sst [smem:[#allocation31_spill]] %s3626_s1 }
   0x2   :  { %3643 = sst [smem:[#allocation32_spill]] %s3627_s2 }
   0x3   :  { %3644 = sst [smem:[#allocation33_spill]] %s3628_s3 }
   0x4   :  { %3645 = sst [smem:[#allocation34_spill]] %s3630_s5 }
   0x5   :  { %3646 = sst [smem:[#allocation35_spill]] %s3635_s10 }
   0x6   :  { %3647 = sst [smem:[#allocation36_spill]] %s3637_s12 }
   0x7   :  { %3648 = sst [smem:[#allocation37_spill]] %s3638_s13 }
   0x8   :  { %18 = vsyncpa [#allocation7], 0 }
   0x9   :  { %20 = vsyncpa [#allocation7 + $0x1], 0 }
   0xa   :  { %21 = vsyncpa [#allocation10], 0 }
   0xb   :  { %22 = vsyncpa [#allocation13], 0 }
   0xc   :  { %23 = vsyncpa [#allocation16], 0 }
   0xd   :  { %24 = vsyncpa [#allocation19], 0 }
   0xe   :  { %25 = vsyncpa [#allocation22], 0 }
   0xf   :  { %26 = vsyncpa [#allocation8], 0 }
  0x10   :  { %28 = vsyncpa [#allocation8 + $0x1], 0  ;;  %s3000_s25 = smov 0   ;;  %s3002_s26 = smov 0  }
  0x11   :  { %s3004_s27 = smov 0   ;;  %s3006_s28 = smov 0  }
  0x12 LB: > { %s3649_s1 = sld [smem:[#allocation31_spill]]  ;;  %s3024_s15 = sadd.s32 4294967295, %s2907_s28   ;;  %s2907_s28 = sphi %s3006_s28, %s3668_s28   ;;  %s2903_s27 = sphi %s3004_s27, %s3667_s27   ;;  %s2899_s26 = sphi %s3002_s26, %s3666_s26   ;;  %s2895_s25 = sphi %s3000_s25, %s3665_s25  }
  0x13   : > { %p2243_p0 = scmp.ge.s32.totalorder %s2907_s28, 1  ;;  %p55_p1 = scmp.eq.s32.totalorder %s3024_s15, 0 }
  0x14   : > { %p343_p2 = scmp.lt.s32.totalorder %s2907_s28, 3  ;;  %s2909_s17 = smov [#allocation9]  }
  0x15   : > { %s357_s18 = sshll.u32 %s2909_s17, 4  ;;  %s3651_s3 = sld [smem:[#allocation33_spill]]  ;;  %s358_s18 = int_to_ptr.vmem [resolvable:$true] %s357_s18 }
  0x16   : > { %p3029_p3 = pnand %p2243_p0, %p343_p2  ;;  %s2910_s23 = smov [#allocation12]  }
  0x17   : > { %s380_s24 = sshll.u32 %s2910_s23, 4  ;;  %s2911_s29 = smov 384   ;;  %s381_s24 = int_to_ptr.vmem [resolvable:$true] %s380_s24 }
  0x18   : > { %s355_s14 = sshll.u32 %s3649_s1, 4  ;;  %p2348_p5 = pneg %p3029_p3  ;;  %s356_s14 = int_to_ptr.hbm [resolvable:$true] %s355_s14 }
  0x19   : > { %s2912_s30 = smov 24   ;;  %s410_s20 = sshll.u32 %s3631_s6, 4  ;;  %s411_s20 = int_to_ptr.hbm [resolvable:$true] %s410_s20 }
  0x1a   : > { %p3041_p6 = pnand %p2348_p5, %p55_p1  ;;  %s2913_s1 = smov [#allocation15]  }
  0x1b   : > { %s378_s21 = sshll.u32 %s3651_s3, 4  ;;  %s412_s3 = sshll.u32 %s2913_s1, 4  ;;  %s379_s21 = int_to_ptr.hbm [resolvable:$true] %s378_s21  ;;  %s413_s3 = int_to_ptr.vmem [resolvable:$true] %s412_s3 }
  0x1c   : > { %2351 = dma.hbm_to_vmem [thread:$0]  (!%p3041_p6), %s356_s14, 16, %s358_s18, [#allocation10]  }
  0x1d   : > { %2357 = dma.hbm_to_vmem [thread:$0]  (!%p3041_p6), %s379_s21, 6144, %s381_s24, [#allocation13], %s2911_s29, %s2911_s29, %s2912_s30  }
  0x1e   : > { %s434_s23 = sshll.u32 %s3633_s8, 4  ;;  %s2914_s14 = smov [#allocation18]   ;;  %s435_s23 = int_to_ptr.hbm [resolvable:$true] %s434_s23 }
  0x1f   : > { %2363 = dma.hbm_to_vmem [thread:$0]  (!%p3041_p6), %s411_s20, 16, %s413_s3, [#allocation16]  }
  0x20   : > { %s436_s18 = sshll.u32 %s2914_s14, 4  ;;  %s3653_s2 = sld [smem:[#allocation32_spill]]  ;;  %s437_s18 = int_to_ptr.vmem [resolvable:$true] %s436_s18 }
  0x21   : > { %2369 = dma.hbm_to_vmem [thread:$0]  (!%p3041_p6), %s435_s23, 16, %s437_s18, [#allocation19]  }
  0x22   : > { %s3654_s5 = sld [smem:[#allocation34_spill]]  ;;  %s2915_s12 = smov [#allocation11]  }
  0x23   : > { %s369_s13 = sshll.u32 %s2915_s12, 4  ;;  %s2916_s3 = smov [#allocation14]   ;;  %s370_s13 = int_to_ptr.vmem [resolvable:$true] %s369_s13 }
  0x24   : > { %s397_s17 = sshll.u32 %s2916_s3, 4  ;;  %s3640_s10 = smov 128   ;;  %s398_s17 = int_to_ptr.vmem [resolvable:$true] %s397_s17 }
  0x25   : > { %s3641_s19 = smov 8   ;;  %s422_s14 = sshll.u32 %s3632_s7, 4  ;;  %s423_s14 = int_to_ptr.hbm [resolvable:$true] %s422_s14 }
  0x26   : > { %s367_s24 = sshll.u32 %s3653_s2, 4  ;;  %s2919_s18 = smov [#allocation17]   ;;  %s368_s24 = int_to_ptr.hbm [resolvable:$true] %s367_s24 }
  0x27   : > { %2354 = dma.hbm_to_vmem [thread:$0]  (!%p3041_p6), %s368_s24, 16, %s370_s13, [#allocation10]  }
  0x28   : > { %s395_s30 = sshll.u32 %s3654_s5, 4  ;;  %s424_s21 = sshll.u32 %s2919_s18, 4  ;;  %s396_s30 = int_to_ptr.hbm [resolvable:$true] %s395_s30  ;;  %s425_s21 = int_to_ptr.vmem [resolvable:$true] %s424_s21 }
  0x29   : > { %2360 = dma.hbm_to_vmem [thread:$0]  (!%p3041_p6), %s396_s30, 2048, %s398_s17, [#allocation13], %s3640_s10, %s3640_s10, %s3641_s19  }
  0x2a   : > { %s445_s29 = sshll.u32 %s3634_s9, 4  ;;  %s2920_s30 = smov [#allocation20]   ;;  %s446_s29 = int_to_ptr.hbm [resolvable:$true] %s445_s29 }
  0x2b   : > { %2366 = dma.hbm_to_vmem [thread:$0]  (!%p3041_p6), %s423_s14, 16, %s425_s21, [#allocation16]  }
  0x2c   : > { %s447_s12 = sshll.u32 %s2920_s30, 4  ;;  %s2921_s13 = smov 512   ;;  %s448_s12 = int_to_ptr.vmem [resolvable:$true] %s447_s12 }
  0x2d   : > { %s2922_s3 = smov 32   ;;  %s462_s23 = sshll.u32 %s3636_s11, 4  ;;  %s463_s23 = int_to_ptr.hbm [resolvable:$true] %s462_s23 }
  0x2e   : > { %2372 = dma.hbm_to_vmem [thread:$0]  (!%p3041_p6), %s446_s29, 8192, %s448_s12, [#allocation19], %s2921_s13, %s2921_s13, %s2922_s3  }
  0x2f   : > { %s2923_s14 = smov [#allocation21]   ;;  %s2242_s21 = sadd.s32 4294967294, %s2907_s28  }
  0x30   : > { %s464_s18 = sshll.u32 %s2923_s14, 4  ;;  %s3092_s24 = sadd.s32 1, %s2907_s28   ;;  %s465_s18 = int_to_ptr.vmem [resolvable:$true] %s464_s18 }
  0x31   : > { %2375 = dma.hbm_to_vmem [thread:$0]  (!%p3041_p6), %s463_s23, 8192, %s465_s18, [#allocation22], %s3640_s10, %s3640_s10, %s3641_s19  }
  0x32   : > { %s41_s1 = sadd.s32 1, %s2903_s27  ;;  %s38_s29 = ssub.s32 %s2907_s28, %s3092_s24 }
  0x33   : > { %p48_p7 = scmp.ne.s32.totalorder %s2903_s27, %s2899_s26  ;;  %p39_p8 = scmp.eq.s32.totalorder %s38_s29, 0 }
  0x34   : > { %p49_p9 = scmp.eq.s32.totalorder %s2907_s28, 0  ;;  %p54_p10 = scmp.ne.s32.totalorder %s2899_s26, %s2895_s25 }
  0x35   : > { %p330_p11 = scmp.eq.s32.totalorder %s3024_s15, 1  ;;  %p336_p0 = scmp.eq.s32.totalorder %s2242_s21, 1 }
  0x36   : > { %s3104_s30 = scalar_select %p39_p8, %s2903_s27, %s41_s1  }
  0x37   : > { %p3108_p12 = por %p55_p1, %p54_p10  ;;  %p3112_p13 = por %p330_p11, %p48_p7 }
  0x38   : > { %p50_p2 = por %p49_p9, %p48_p7  ;;  %s481_s13 = sand.u32 1, %s2903_s27  }
  0x39   : > { %p3117_p5 = por %p336_p0, %p54_p10  ;;  %p2393_p6 = scmp.lt.s32.totalorder %s2907_s28, 2 }
  0x3a   : > { %s2254_s17 = sshll.u32 %s481_s13, 4  ;;  %s2306_s20 = sshll.u32 %s2907_s28, 4 }
  0x3b   : > { %s490_s18 = scalar_lea.hbm %s3625_s0, %s2306_s20  ;;  %s485_s29 = scalar_lea.vmem [#allocation6], %s2254_s17 }
  0x3c   : > { %s491_s1 = sshll.u32 %s490_s18, 4  ;;  %s493_s10 = sshll.u32 %s485_s29, 4  ;;  %s492_s1 = int_to_ptr.hbm [resolvable:$true] %s491_s1  ;;  %s494_s10 = int_to_ptr.vmem [resolvable:$true] %s493_s10 }
  0x3d   : > { %p3126_p8 = pnand %p2393_p6, %p50_p2  ;;  %s482_s19 = scalar_lea.sflag [#allocation7], %s481_s13 }
  0x3e   : > { %s2791_s2 = sshra.s32 %s492_s1, 4  ;;  %s2798_s17 = scalar_lea.hbm %s3625_s0, 32  ;;  %s2792_s2 = int_to_ptr.hbm [resolvable:$true] %s2791_s2 }
  0x3f   : > { %s2793_s5 = scalar_lea.hbm %s2792_s2, 16  ;;  %p2795_p9 = pneg %p3126_p8 }
  0x40   : > { %p2794_p7 = scmp.ne.s32.totalorder %s2792_s2, %s2793_s5  ;;  %p2799_p0 = scmp.lt.s32.totalorder %s2792_s2, %s3625_s0 }
  0x41   : > { %p2800_p2 = scmp.lt.s32.totalorder %s2798_s17, %s2793_s5 }
  0x42   : > { %p2796_p10 = pnand %p2795_p9, %p2794_p7 }
  0x43   : > { %p2801_p6 = por %p2800_p2, %p2799_p0 }
  0x44   : > { %p2797_p11 = pneg %p2796_p10 }
  0x46   : > { %p2802_p4 = pnand %p2801_p6, %p2797_p11 }
  0x48   : > { %2805 = shalt.err (!%p2802_p4)
}
  0x49   : > { %s3659_s13 = smov 8   ;;  %s3660_s29 = smov 128  }
  0x4a   : > { %2379 = dma.hbm_to_vmem [thread:$0]  (!%p3126_p8), %s492_s1, 256, %s494_s10, %s482_s19, %s3660_s29, %s3660_s29, %s3659_s13  }
  0x4b   : > { %505 = sbr.rel (%p3029_p3) target bundleno = 2053 (0x805), region = 72  ;;  %s3146_s20 = sand.u32 (!%p3029_p3), 1, %s2899_s26  }
  0x4c   : > { %s2258_s2 = sshll.u32 (!%p3029_p3), %s3146_s20, 4  ;;  %s508_s5 = scalar_lea.sflag (!%p3029_p3), [#allocation7], %s3146_s20 }
  0x4d   : > { %s511_s23 = scalar_lea.vmem (!%p3029_p3), [#allocation6], %s2258_s2 }
  0x50   : > { %2866 = dma.done.wait (%p3108_p12), %s508_s5, 256  }
  0x51   : > { %2868 = vsyncadd (%p3108_p12), %s508_s5, 4294967040 }
  0x52   : > { %2870 = dma.done.wait (%p55_p1), [#allocation10], 32  }
  0x53   : > { %2872 = vsyncadd (%p55_p1), [#allocation10], 4294967264 }
  0x54   : > { %2874 = dma.done.wait (%p55_p1), [#allocation13], 8192  }
  0x55   : > { %2876 = vsyncadd (%p55_p1), [#allocation13], 4294959104 }
  0x56   : > { %2878 = dma.done.wait (%p55_p1), [#allocation16], 32  }
  0x57   : > { %2880 = vsyncadd (%p55_p1), [#allocation16], 4294967264 }
  0x58   : > { %2882 = dma.done.wait (%p55_p1), [#allocation19], 8208  }
  0x59   : > { %2884 = vsyncadd (%p55_p1), [#allocation19], 4294959088 }
  0x5a   : > { %2886 = dma.done.wait (%p55_p1), [#allocation22], 8192  }
  0x5b   : > { %2888 = vsyncadd (%p55_p1), [#allocation22], 4294959104  ;;  %v3176_v0 = vld [vmem:[%s511_s23] sm:$0xff]  ;;  %v3179_v1 = vld [vmem:[%s511_s23 + $0x8] sm:$0xff]  ;;  %v2924_v2 = vmov 128.0   ;;  %vm788_vm7 = vcmask 261120  }
  0x5c   : > { %604 = vadd.xlane.f32.xlu0 %v3176_v0  ;;  %2463 = vrcp.f32 %v2924_v2  ;;  %v706_v5 = vld [vmem:[#allocation12 + $0x168] sm:$0xff]  ;;  %v707_v6 = vld [vmem:[#allocation12 + $0x170] sm:$0xff]  ;;  %v708_v7 = vld [vmem:[#allocation12 + $0x178] sm:$0xff]  ;;  %s2925_s19 = smov 96   ;;  %s2926_s22 = smov 32   ;;  %vm1046_vm8 = vcmask 130048  }
  0x5d   : > { %717 = vmatpush.msra.mxu0 %v706_v5  ;;  %740 = vmatpush.msra.mxu1 %v707_v6  ;;  %v703_v8 = vld [vmem:[#allocation12 + $0x150] sm:$0xff]  ;;  %v704_v9 = vld [vmem:[#allocation12 + $0x158] sm:$0xff]  ;;  %v705_v10 = vld [vmem:[#allocation12 + $0x160] sm:$0xff]  ;;  %s2927_s1 = smov 64   ;;  %vm1261_vm9 = vcmask 523520   ;;  %vm1272_vm10 = vcmask 785920  }
  0x5e   : > { %763 = vmatpush.msra.mxu2 %v708_v7  ;;  %v700_v23 = vld [vmem:[#allocation12 + $0x138] sm:$0xff]  ;;  %v701_v24 = vld [vmem:[#allocation12 + $0x140] sm:$0xff]  ;;  %v702_v25 = vld [vmem:[#allocation12 + $0x148] sm:$0xff]  ;;  %vm1283_vm11 = vcmask 1048320   ;;  %s3661_s14 = sld [smem:[#allocation35_spill]]  ;;  %s599_s5 = scalar_lea.vmem [#allocation23], %s2258_s2 }
  0x5f   : > { %718 = vmatpush.msra.mxu0 %v703_v8  ;;  %741 = vmatpush.msra.mxu1 %v704_v9  ;;  %v697_v26 = vld [vmem:[#allocation12 + $0x120] sm:$0xff]  ;;  %v698_v27 = vld [vmem:[#allocation12 + $0x128] sm:$0xff]  ;;  %v699_v28 = vld [vmem:[#allocation12 + $0x130] sm:$0xff]  ;;  %s3662_s29 = sld [smem:[#allocation36_spill]]  ;;  %s2307_s23 = sshll.u32 %s3024_s15, 4 }
  0x60   : > { %764 = vmatpush.msra.mxu2 %v705_v10  ;;  %v694_v29 = vld [vmem:[#allocation12 + $0x108] sm:$0xff]  ;;  %v695_v30 = vld [vmem:[#allocation12 + $0x110] sm:$0xff]  ;;  %v696_v31 = vld [vmem:[#allocation12 + $0x118] sm:$0xff]  ;;  %s2068_s2 = scalar_lea.sflag [#allocation8], %s3146_s20 }
  0x61   : > { %719 = vmatpush.msra.mxu0 %v700_v23  ;;  %742 = vmatpush.msra.mxu1 %v701_v24  ;;  %v691_v32 = vld [vmem:[#allocation12 + $0xf0] sm:$0xff]  ;;  %v692_v33 = vld [vmem:[#allocation12 + $0xf8] sm:$0xff]  ;;  %v693_v34 = vld [vmem:[#allocation12 + $0x100] sm:$0xff] }
  0x62   : > { %v2464_v3 = vpop.eup %2463  ;;  %765 = vmatpush.msra.mxu2 %v702_v25  ;;  %v688_v35 = vld [vmem:[#allocation12 + $0xd8] sm:$0xff]  ;;  %v689_v36 = vld [vmem:[#allocation12 + $0xe0] sm:$0xff]  ;;  %v690_v37 = vld [vmem:[#allocation12 + $0xe8] sm:$0xff] }
  0x63   : > { %v609_v4 = vmul.f32 128.0, %v2464_v3  ;;  %vm613_vm0 = vweird.f32 %v2464_v3  ;;  %720 = vmatpush.msra.mxu0 %v697_v26  ;;  %743 = vmatpush.msra.mxu1 %v698_v27  ;;  %v685_v38 = vld [vmem:[#allocation12 + $0xc0] sm:$0xff]  ;;  %v686_v39 = vld [vmem:[#allocation12 + $0xc8] sm:$0xff]  ;;  %v687_v40 = vld [vmem:[#allocation12 + $0xd0] sm:$0xff] }
  0x64   : > { %606 = vadd.xlane.f32.xlu0 %v3179_v1  ;;  %766 = vmatpush.msra.mxu2 %v699_v28  ;;  %v682_v41 = vld [vmem:[#allocation12 + $0xa8] sm:$0xff]  ;;  %v683_v42 = vld [vmem:[#allocation12 + $0xb0] sm:$0xff]  ;;  %v684_v43 = vld [vmem:[#allocation12 + $0xb8] sm:$0xff] }
  0x65   : > { %v610_v11 = vsub.f32 1.0, %v609_v4  ;;  %721 = vmatpush.msra.mxu0 %v694_v29  ;;  %744 = vmatpush.msra.mxu1 %v695_v30  ;;  %v679_v44 = vld [vmem:[#allocation12 + $0x90] sm:$0xff]  ;;  %v680_v45 = vld [vmem:[#allocation12 + $0x98] sm:$0xff]  ;;  %v681_v46 = vld [vmem:[#allocation12 + $0xa0] sm:$0xff] }
  0x66   : > { %767 = vmatpush.msra.mxu2 %v696_v31  ;;  %v676_v47 = vld [vmem:[#allocation12 + $0x78] sm:$0xff]  ;;  %v677_v48 = vld [vmem:[#allocation12 + $0x80] sm:$0xff]  ;;  %v678_v49 = vld [vmem:[#allocation12 + $0x88] sm:$0xff] }
  0x67   : > { %v611_v12 = vmul.f32 %v2464_v3, %v610_v11  ;;  %722 = vmatpush.msra.mxu0 %v691_v32  ;;  %745 = vmatpush.msra.mxu1 %v692_v33  ;;  %v673_v50 = vld [vmem:[#allocation12 + $0x60] sm:$0xff]  ;;  %v674_v51 = vld [vmem:[#allocation12 + $0x68] sm:$0xff]  ;;  %v675_v52 = vld [vmem:[#allocation12 + $0x70] sm:$0xff] }
  0x68   : > { %768 = vmatpush.msra.mxu2 %v693_v34  ;;  %v670_v53 = vld [vmem:[#allocation12 + $0x48] sm:$0xff]  ;;  %v671_v54 = vld [vmem:[#allocation12 + $0x50] sm:$0xff]  ;;  %v672_v55 = vld [vmem:[#allocation12 + $0x58] sm:$0xff] }
  0x69   : > { %v612_v13 = vadd.f32 %v2464_v3, %v611_v12  ;;  %723 = vmatpush.msra.mxu0 %v688_v35  ;;  %746 = vmatpush.msra.mxu1 %v689_v36  ;;  %v667_v56 = vld [vmem:[#allocation12 + $0x30] sm:$0xff]  ;;  %v668_v57 = vld [vmem:[#allocation12 + $0x38] sm:$0xff]  ;;  %v669_v58 = vld [vmem:[#allocation12 + $0x40] sm:$0xff] }
  0x6a   : > { %769 = vmatpush.msra.mxu2 %v690_v37  ;;  %v664_v59 = vld [vmem:[#allocation12 + $0x18] sm:$0xff]  ;;  %v665_v60 = vld [vmem:[#allocation12 + $0x20] sm:$0xff]  ;;  %v666_v61 = vld [vmem:[#allocation12 + $0x28] sm:$0xff] }
  0x6b   : > { %v3182_v14 = vsel %vm613_vm0, %v2464_v3, %v612_v13  ;;  %724 = vmatpush.msra.mxu0 %v685_v38  ;;  %747 = vmatpush.msra.mxu1 %v686_v39  ;;  %v661_v62 = vld [vmem:[#allocation12] sm:$0xff]  ;;  %v662_v63 = vld [vmem:[#allocation12 + $0x8] sm:$0xff]  ;;  %v663_v2 = vld [vmem:[#allocation12 + $0x10] sm:$0xff] }
  0x6c   : > { %770 = vmatpush.msra.mxu2 %v687_v40  ;;  %v2458_v24 = vld [vmem:[#allocation11] ss:$0 sm:$0xff] }
  0x6d   : > { %725 = vmatpush.msra.mxu0 %v682_v41  ;;  %748 = vmatpush.msra.mxu1 %v683_v42 }
  0x6e   : > { %771 = vmatpush.msra.mxu2 %v684_v43 }
  0x6f   : > { %726 = vmatpush.msra.mxu0 %v679_v44  ;;  %749 = vmatpush.msra.mxu1 %v680_v45 }
  0x70   : > { %772 = vmatpush.msra.mxu2 %v681_v46 }
  0x71   : > { %727 = vmatpush.msra.mxu0 %v676_v47  ;;  %750 = vmatpush.msra.mxu1 %v677_v48 }
  0x72   : > { %773 = vmatpush.msra.mxu2 %v678_v49 }
  0x73   : > { %728 = vmatpush.msra.mxu0 %v673_v50  ;;  %751 = vmatpush.msra.mxu1 %v674_v51 }
  0x74   : > { %774 = vmatpush.msra.mxu2 %v675_v52 }
  0x75   : > { %729 = vmatpush.msra.mxu0 %v670_v53  ;;  %752 = vmatpush.msra.mxu1 %v671_v54 }
  0x76   : > { %775 = vmatpush.msra.mxu2 %v672_v55 }
  0x77   : > { %730 = vmatpush.msra.mxu0 %v667_v56  ;;  %753 = vmatpush.msra.mxu1 %v668_v57 }
  0x78   : > { %776 = vmatpush.msra.mxu2 %v669_v58 }
  0x79   : > { %731 = vmatpush.msra.mxu0 %v664_v59  ;;  %754 = vmatpush.msra.mxu1 %v665_v60 }
  0x7a   : > { %777 = vmatpush.msra.mxu2 %v666_v61 }
  0x7b   : > { %732 = vmatpush.msra.mxu0 %v661_v62  ;;  %755 = vmatpush.msra.mxu1 %v662_v63 }
  0x7c   : > { %778 = vmatpush.msra.mxu2 %v663_v2 }
  0xcf   : > { %v605_v15 = vpop.xlane.xlu0 %604 }
  0xd0   : > { %v615_v16 = vmul.f32 %v3182_v14, %v605_v15 }
  0xd2   : > { %v3186_v17 = vsub.f32 %v3176_v0, %v615_v16 }
  0xd4   : > { %v619_v18 = vmul.f32 %v3186_v17, %v3186_v17 }
  0xd6   : > { %621 = vadd.xlane.f32.xlu1 %v619_v18 }
  0xd7   : > { %v607_v19 = vpop.xlane.xlu0 %606 }
  0xd8   : > { %v616_v20 = vmul.f32 %v3182_v14, %v607_v19  ;;  %v2457_v19 = vld [vmem:[#allocation9] ss:$0 sm:$0xff] }
  0xda   : > { %v3192_v21 = vsub.f32 %v3179_v1, %v616_v20 }
  0xdc   : > { %v620_v22 = vmul.f32 %v3192_v21, %v3192_v21 }
  0xde   : > { %623 = vadd.xlane.f32.xlu1 %v620_v22 }
 0x149   : > { %v622_v3 = vpop.xlane.xlu1 %621 }
 0x14a   : > { %v625_v4 = vmul.f32 %v622_v3, %v3182_v14 }
 0x14c   : > { %v627_v5 = vadd.f32 1e-05, %v625_v4 }
 0x14e   : > { %2465 = vrsqrt.f32 %v627_v5  ;;  %vm635_vm2 = vweird.f32 %v627_v5 }
 0x151   : > { %v624_v6 = vpop.xlane.xlu1 %623 }
 0x152   : > { %v626_v7 = vmul.f32 %v624_v6, %v3182_v14 }
 0x154   : > { %v2466_v8 = vpop.eup %2465  ;;  %v628_v9 = vadd.f32 1e-05, %v626_v7 }
 0x155   : > { %v630_v10 = vmul.f32 %v2466_v8, %v627_v5  ;;  %vm636_vm1 = vweird.f32 %v2466_v8 }
 0x156   : > { %2467 = vrsqrt.f32 %v628_v9  ;;  %vm637_vm3 = vmor %vm635_vm2, %vm636_vm1  ;;  %vm645_vm5 = vweird.f32 %v628_v9 }
 0x157   : > { %v631_v11 = vmul.f32 %v2466_v8, %v630_v10 }
 0x159   : > { %v632_v12 = vmul.f32 0.5, %v631_v11 }
 0x15b   : > { %v633_v13 = vsub.f32 1.5, %v632_v12 }
 0x15c   : > { %v2468_v15 = vpop.eup %2467 }
 0x15d   : > { %v634_v16 = vmul.f32 %v2466_v8, %v633_v13  ;;  %v640_v18 = vmul.f32 %v2468_v15, %v628_v9  ;;  %vm646_vm4 = vweird.f32 %v2468_v15 }
 0x15e   : > { %vm647_vm6 = vmor %vm645_vm5, %vm646_vm4 }
 0x15f   : > { %v638_v20 = vsel %vm637_vm3, %v2466_v8, %v634_v16  ;;  %v641_v22 = vmul.f32 %v2468_v15, %v640_v18 }
 0x160   : > { %v649_v23 = vmul.f32 %v638_v20, %v3186_v17  ;;  %v709_v17 = vld [vmem:[%s3629_s4] sm:$0x7] }
 0x161   : > { %v642_v25 = vmul.f32 0.5, %v641_v22  ;;  %v711_v34 = vperm.slane %v709_v17, 0  ;;  %v712_v35 = vperm.slane %v709_v17, 1 }
 0x162   : > { %v654_v26 = vmul.f32 %v2457_v19, %v649_v23 }
 0x163   : > { %v643_v27 = vsub.f32 1.5, %v642_v25 }
 0x164   : > { %v659_v28 = vadd.f32 %v2458_v24, %v654_v26 }
 0x165   : > { %v644_v29 = vmul.f32 %v2468_v15, %v643_v27 }
 0x166   : > { %733 = vmatmul.f32.vlgmr.msra.gmra.mxu0 %v659_v28  ;;  %756 = vmatmul.f32.vlgmr.msra.gmra.mxu1 %v659_v28 }
 0x167   : > { %v648_v30 = vsel %vm647_vm6, %v2468_v15, %v644_v29  ;;  %779 = vmatmul.f32.vlgmr.msra.gmra.mxu2 %v659_v28 }
 0x168   : > { %v650_v31 = vmul.f32 %v648_v30, %v3192_v21  ;;  %v713_v21 = vperm.slane %v709_v17, 2 }
 0x16a   : > { %v655_v32 = vmul.f32 %v2457_v19, %v650_v31 }
 0x16c   : > { %v660_v33 = vadd.f32 %v2458_v24, %v655_v32 }
 0x16e   : > { %736 = vmatmul.f32.gmra.mxu0 %v660_v33  ;;  %759 = vmatmul.f32.gmra.mxu1 %v660_v33 }
 0x16f   : > { %782 = vmatmul.f32.gmra.mxu2 %v660_v33 }
 0x1e3   : > { %v734_v36 = vpop.f32.mrf.mxu0  ;;  %v757_v37 = vpop.f32.mrf.mxu1 }
 0x1e4   : > { %v735_v38 = vadd.f32 %v734_v36, %v711_v34  ;;  %v758_v39 = vadd.f32 %v757_v37, %v712_v35 }
 0x1e6   : > { %v786_v40 = vmul.f32 0.17677669, %v735_v38  ;;  %791 = vst.msk [vmem:[#allocation3] sm:$0xff] %vm788_vm7, %v758_v39  ;;  %808 = vrot.lane.b32.xlu2 %v758_v39, %s2925_s19 }
 0x1e8   : > { %789 = vst.msk [vmem:[#allocation2] sm:$0xff] %vm788_vm7, %v786_v40  ;;  %797 = vrot.lane.b32.xlu0 %v786_v40, %s2925_s19 }
 0x1ea   : > { %v780_v41 = vpop.f32.mrf.mxu2 }
 0x1eb   : > { %v3207_v42 = vadd.f32 %v780_v41, %v713_v21  ;;  %v737_v43 = vpop.f32.mrf.mxu0  ;;  %v760_v44 = vpop.f32.mrf.mxu1 }
 0x1ec   : > { %v738_v45 = vadd.f32 %v737_v43, %v711_v34  ;;  %v761_v46 = vadd.f32 %v760_v44, %v712_v35 }
 0x1ed   : > { %793 = vst.msk [vmem:[#allocation4] sm:$0xff] %vm788_vm7, %v3207_v42  ;;  %v890_v51 = vld [vmem:[#allocation3] sm:$0xff] }
 0x1ee   : > { %v787_v47 = vmul.f32 0.17677669, %v738_v45  ;;  %792 = vst.msk [vmem:[#allocation3 + $0x8] sm:$0xff] %vm788_vm7, %v761_v46  ;;  %810 = vrot.lane.b32.xlu2 %v761_v46, %s2925_s19 }
 0x1ef   : > { %v882_v53 = vld [vmem:[#allocation2] sm:$0xff] }
 0x1f0   : > { %790 = vst.msk [vmem:[#allocation2 + $0x8] sm:$0xff] %vm788_vm7, %v787_v47  ;;  %866 = vrot.lane.b32.xlu0 %v761_v46, %s2926_s22  ;;  %799 = vrot.lane.b32.xlu1 %v787_v47, %s2925_s19 }
 0x1f2   : > { %v783_v48 = vpop.f32.mrf.mxu2 }
 0x1f3   : > { %v3216_v49 = vadd.f32 %v783_v48, %v713_v21 }
 0x1f4   : > { %v898_v54 = vld [vmem:[#allocation4] sm:$0xff] }
 0x1f5   : > { %794 = vst.msk [vmem:[#allocation4 + $0x8] sm:$0xff] %vm788_vm7, %v3216_v49  ;;  %v891_v50 = vld [vmem:[#allocation3 + $0x8] sm:$0xff] }
 0x1f6   : > { %839 = vrot.lane.b32.xlu2 %v761_v46, %s2927_s1  ;;  %2269 = vmatpush.xpose.msk.msra.mxu3 %vm788_vm7, %v891_v50 }
 0x1f7   : > { %v883_v55 = vld [vmem:[#allocation2 + $0x8] sm:$0xff] }
 0x1f8   : > { %855 = vrot.lane.b32.xlu0 %v786_v40, %s2926_s22  ;;  %864 = vrot.lane.b32.xlu1 %v758_v39, %s2926_s22 }
 0x1fa   : > { %2270 = vmatpush.xpose.msk.msra.mxu3 %vm788_vm7, %v890_v51 }
 0x1fc   : > { %v899_v52 = vld [vmem:[#allocation4 + $0x8] sm:$0xff] }
 0x1fd   : > { %1155 = vmatpush.msrb.mxu2 %v899_v52  ;;  %2271 = vmatmul.msk.f32.vlgmr.msra.gmra.mxu3 %vm788_vm7, %v882_v53 }
 0x1fe   : > { %837 = vrot.lane.b32.xlu2 %v758_v39, %s2927_s1 }
 0x1ff   : > { %1156 = vmatpush.msrb.mxu2 %v898_v54 }
 0x200   : > { %821 = vrot.lane.b32.xlu0 %v3216_v49, %s2925_s19 }
 0x205   : > { %2272 = vmatmul.msk.f32.gmra.mxu3 %vm788_vm7, %v883_v55 }
 0x206   : > { %828 = vrot.lane.b32.xlu2 %v786_v40, %s2927_s1 }
 0x20e   : > { %830 = vrot.lane.b32.xlu2 %v787_v47, %s2927_s1 }
 0x216   : > { %857 = vrot.lane.b32.xlu2 %v787_v47, %s2926_s22 }
 0x21e   : > { %848 = vrot.lane.b32.xlu2 %v3216_v49, %s2927_s1 }
 0x240   : > { %v809_v56 = vpop.permute.xlu2 %808 }
 0x241   : > { %815 = vst.msk [vmem:[#allocation3 + $0x10] sm:$0xff] %vm788_vm7, %v809_v56 }
 0x248   : > { %v811_v57 = vpop.permute.xlu2 %810  ;;  %v892_v60 = vld [vmem:[#allocation3 + $0x10] sm:$0xff] }
 0x249   : > { %816 = vst.msk [vmem:[#allocation3 + $0x18] sm:$0xff] %vm788_vm7, %v811_v57 }
 0x250   : > { %v840_v58 = vpop.permute.xlu2 %839  ;;  %v893_v59 = vld [vmem:[#allocation3 + $0x18] sm:$0xff] }
 0x251   : > { %845 = vst.msk [vmem:[#allocation3 + $0x28] sm:$0xff] %vm788_vm7, %v840_v58  ;;  %2273 = vmatpush.xpose.msk.msrb.mxu3 %vm788_vm7, %v893_v59 }
 0x255   : > { %2274 = vmatpush.xpose.msk.msrb.mxu3 %vm788_vm7, %v892_v60 }
 0x258   : > { %v838_v61 = vpop.permute.xlu2 %837  ;;  %v895_v62 = vld [vmem:[#allocation3 + $0x28] sm:$0xff] }
 0x259   : > { %844 = vst.msk [vmem:[#allocation3 + $0x20] sm:$0xff] %vm788_vm7, %v838_v61  ;;  %2277 = vmatpush.xpose.msk.msra.mxu3 %vm788_vm7, %v895_v62 }
 0x25a   : > { %v798_v63 = vpop.permute.xlu0 %797 }
 0x25b   : > { %804 = vst.msk [vmem:[#allocation2 + $0x10] sm:$0xff] %vm788_vm7, %v798_v63 }
 0x260   : > { %v829_v2 = vpop.permute.xlu2 %828  ;;  %v894_v3 = vld [vmem:[#allocation3 + $0x20] sm:$0xff] }
 0x261   : > { %835 = vst.msk [vmem:[#allocation2 + $0x20] sm:$0xff] %vm788_vm7, %v829_v2  ;;  %2278 = vmatpush.xpose.msk.msra.mxu3 %vm788_vm7, %v894_v3 }
 0x262   : > { %v800_v4 = vpop.permute.xlu1 %799  ;;  %v867_v5 = vpop.permute.xlu0 %866  ;;  %v884_v6 = vld [vmem:[#allocation2 + $0x10] sm:$0xff] }
 0x263   : > { %805 = vst.msk [vmem:[#allocation2 + $0x18] sm:$0xff] %vm788_vm7, %v800_v4  ;;  %2275 = vmatmul.msk.f32.vlgmr.msrb.gmra.mxu3 %vm788_vm7, %v884_v6 }
 0x264   : > { %872 = vst.msk [vmem:[#allocation3 + $0x38] sm:$0xff] %vm788_vm7, %v867_v5 }
 0x268   : > { %v831_v7 = vpop.permute.xlu2 %830  ;;  %v886_v15 = vld [vmem:[#allocation2 + $0x20] sm:$0xff] }
 0x269   : > { %836 = vst.msk [vmem:[#allocation2 + $0x28] sm:$0xff] %vm788_vm7, %v831_v7 }
 0x26a   : > { %v865_v8 = vpop.permute.xlu1 %864  ;;  %v856_v9 = vpop.permute.xlu0 %855  ;;  %v885_v10 = vld [vmem:[#allocation2 + $0x18] sm:$0xff] }
 0x26b   : > { %871 = vst.msk [vmem:[#allocation3 + $0x30] sm:$0xff] %vm788_vm7, %v865_v8  ;;  %2276 = vmatmul.msk.f32.gmra.mxu3 %vm788_vm7, %v885_v10  ;;  %v897_v11 = vld [vmem:[#allocation3 + $0x38] sm:$0xff] }
 0x26c   : > { %862 = vst.msk [vmem:[#allocation2 + $0x30] sm:$0xff] %vm788_vm7, %v856_v9  ;;  %2281 = vmatpush.xpose.msk.msrb.mxu0 %vm788_vm7, %v897_v11 }
 0x270   : > { %v858_v12 = vpop.permute.xlu2 %857  ;;  %v887_v20 = vld [vmem:[#allocation2 + $0x28] sm:$0xff] }
 0x271   : > { %863 = vst.msk [vmem:[#allocation2 + $0x38] sm:$0xff] %vm788_vm7, %v858_v12 }
 0x272   : > { %v822_v13 = vpop.permute.xlu0 %821  ;;  %v896_v16 = vld [vmem:[#allocation3 + $0x30] sm:$0xff] }
 0x273   : > { %827 = vst.msk [vmem:[#allocation4 + $0x18] sm:$0xff] %vm788_vm7, %v822_v13  ;;  %2279 = vmatmul.msk.f32.vlgmr.msra.gmra.mxu3 %vm788_vm7, %v886_v15  ;;  %2282 = vmatpush.xpose.msk.msrb.mxu0 %vm788_vm7, %v896_v16  ;;  %v888_v18 = vld [vmem:[#allocation2 + $0x30] sm:$0xff] }
 0x276   : > { %2283 = vmatmul.msk.f32.vlgmr.msrb.gmra.mxu0 %vm788_vm7, %v888_v18 }
 0x278   : > { %v849_v19 = vpop.permute.xlu2 %848  ;;  %v889_v23 = vld [vmem:[#allocation2 + $0x38] sm:$0xff] }
 0x279   : > { %854 = vst.msk [vmem:[#allocation4 + $0x28] sm:$0xff] %vm788_vm7, %v849_v19 }
 0x27a   : > { %v901_v22 = vld [vmem:[#allocation4 + $0x18] sm:$0xff] }
 0x27b   : > { %2280 = vmatmul.msk.f32.gmra.mxu3 %vm788_vm7, %v887_v20  ;;  %1184 = vmatpush.msra.mxu2 %v901_v22 }
 0x27e   : > { %2284 = vmatmul.msk.f32.gmra.mxu0 %vm788_vm7, %v889_v23 }
 0x280   : > { %v935_v24 = vpop.f32.mrf.mxu3  ;;  %v903_v25 = vld [vmem:[#allocation4 + $0x28] sm:$0xff] }
 0x281   : > { %1213 = vmatpush.msrb.mxu3 %v903_v25  ;;  %v1047_v26 = vsel %vm1046_vm8, %v935_v24, -inf }
 0x282   : > { %1048 = vmax.xlane.f32.xlu1 %v1047_v26 }
 0x288   : > { %v938_v27 = vpop.f32.mrf.mxu3 }
 0x289   : > { %v1050_v28 = vsel %vm1046_vm8, %v938_v27, -inf }
 0x28a   : > { %1051 = vmax.xlane.f32.xlu0 %v1050_v28 }
 0x2e6   : > { %v970_v29 = vpop.f32.mrf.mxu3 }
 0x2e7   : > { %v1053_v38 = vsel %vm1046_vm8, %v970_v29, -inf }
 0x2ee   : > { %v973_v30 = vpop.f32.mrf.mxu3 }
 0x2ef   : > { %v1056_v45 = vsel %vm1046_vm8, %v973_v30, -inf }
 0x2f3   : > { %v1040_v31 = vpop.f32.mrf.mxu0 }
 0x2f4   : > { %v1065_v32 = vsel %vm1046_vm8, %v1040_v31, -inf }
 0x2f5   : > { %v1049_v33 = vpop.xlane.xlu1 %1048  ;;  %1066 = vmax.xlane.f32.xlu2 %v1065_v32 }
 0x2f6   : > { %v1071_v17 = vsub.f32 %v935_v24, %v1049_v33  ;;  %v1005_v34 = vpop.f32.mrf.mxu3 }
 0x2f7   : > { %v1059_v35 = vsel %vm1046_vm8, %v1005_v34, -inf }
 0x2f8   : > { %v1079_v36 = vmul.f32 1.442695, %v1071_v17  ;;  %1060 = vmax.xlane.f32.xlu1 %v1059_v35 }
 0x2fa   : > { %2469 = vpow2.f32 %v1079_v36 }
 0x2fb   : > { %v3265_v37 = vpop.f32.mrf.mxu0 }
 0x2fc   : > { %v1068_v39 = vsel %vm1046_vm8, %v3265_v37, -inf }
 0x2fd   : > { %1054 = vmax.xlane.f32.xlu2 %v1053_v38  ;;  %1069 = vmax.xlane.f32.xlu0 %v1068_v39  ;;  %v1052_v40 = vpop.xlane.xlu0 %1051 }
 0x2fe   : > { %v1072_v21 = vsub.f32 %v938_v27, %v1052_v40  ;;  %v1008_v48 = vpop.f32.mrf.mxu3 }
 0x2ff   : > { %v1062_v50 = vsel %vm1046_vm8, %v1008_v48, -inf }
 0x300   : > { %v1081_v41 = vmul.f32 1.442695, %v1072_v21  ;;  %v2470_v43 = vpop.eup %2469 }
 0x301   : > { %v1095_v44 = vsel %vm1046_vm8, %v2470_v43, 0.0 }
 0x302   : > { %2471 = vpow2.f32 %v1081_v41 }
 0x305   : > { %1096 = vadd.xlane.f32.xlu2 %v1095_v44  ;;  %1057 = vmax.xlane.f32.xlu0 %v1056_v45 }
 0x308   : > { %v2472_v46 = vpop.eup %2471 }
 0x309   : > { %v1098_v47 = vsel %vm1046_vm8, %v2472_v46, 0.0 }
 0x30a   : > { %1099 = vadd.xlane.f32.xlu1 %v1098_v47 }
 0x312   : > { %1063 = vmax.xlane.f32.xlu1 %v1062_v50 }
 0x31d   : > { %846 = vrot.lane.b32.xlu2 %v3207_v42, %s2927_s1 }
 0x325   : > { %875 = vrot.lane.b32.xlu2 %v3216_v49, %s2926_s22 }
 0x32b   : > { %819 = vrot.lane.b32.xlu1 %v3207_v42, %s2925_s19 }
 0x368   : > { %v1067_v51 = vpop.xlane.xlu2 %1066 }
 0x369   : > { %v1077_v52 = vsub.f32 %v1040_v31, %v1067_v51 }
 0x36b   : > { %v1091_v53 = vmul.f32 1.442695, %v1077_v52  ;;  %v1061_v54 = vpop.xlane.xlu1 %1060 }
 0x36c   : > { %v1075_v55 = vsub.f32 %v1005_v34, %v1061_v54 }
 0x36d   : > { %2473 = vpow2.f32 %v1091_v53 }
 0x36e   : > { %v1087_v56 = vmul.f32 1.442695, %v1075_v55 }
 0x370   : > { %2475 = vpow2.f32 %v1087_v56  ;;  %v1055_v57 = vpop.xlane.xlu2 %1054  ;;  %v1070_v58 = vpop.xlane.xlu0 %1069 }
 0x371   : > { %v1073_v59 = vsub.f32 %v970_v29, %v1055_v57  ;;  %v1078_v28 = vsub.f32 %v3265_v37, %v1070_v58  ;;  %v1303_v58 = vld [vmem:[#allocation14 + $0x78] sm:$0xff] }
 0x372   : > { %1308 = vmatpush.msrb.mxu1 %v1303_v58  ;;  %v1427_v58 = vld [vmem:[#allocation20 + $0x150] sm:$0xff] }
 0x373   : > { %v3280_v60 = vpop.eup %2473  ;;  %v1083_v61 = vmul.f32 1.442695, %v1073_v59  ;;  %v1302_v59 = vld [vmem:[#allocation14 + $0x70] sm:$0xff] }
 0x374   : > { %v1113_v49 = vsel %vm1046_vm8, %v3280_v60, 0.0  ;;  %1309 = vmatpush.msrb.mxu1 %v1302_v59  ;;  %v1428_v59 = vld [vmem:[#allocation20 + $0x158] sm:$0xff] }
 0x375   : > { %2477 = vpow2.f32 %v1083_v61  ;;  %1114 = vadd.xlane.f32.xlu2 %v1113_v49  ;;  %v1301_v49 = vld [vmem:[#allocation14 + $0x68] sm:$0xff] }
 0x376   : > { %v2476_v62 = vpop.eup %2475  ;;  %1310 = vmatpush.msrb.mxu1 %v1301_v49  ;;  %v1423_v49 = vld [vmem:[#allocation20 + $0x130] sm:$0xff] }
 0x377   : > { %v1107_v63 = vsel %vm1046_vm8, %v2476_v62, 0.0 }
 0x378   : > { %v1097_v2 = vpop.xlane.xlu2 %1096  ;;  %1108 = vadd.xlane.f32.xlu0 %v1107_v63  ;;  %v1058_v3 = vpop.xlane.xlu0 %1057  ;;  %v1299_v63 = vld [vmem:[#allocation14 + $0x58] sm:$0xff] }
 0x379   : > { %2479 = vrcp.f32 %v1097_v2  ;;  %v1074_v4 = vsub.f32 %v973_v30, %v1058_v3  ;;  %v1093_v30 = vmul.f32 1.442695, %v1078_v28  ;;  %v1298_v2 = vld [vmem:[#allocation14 + $0x50] sm:$0xff]  ;;  %v1297_v3 = vld [vmem:[#allocation14 + $0x48] sm:$0xff] }
 0x37b   : > { %v2478_v5 = vpop.eup %2477  ;;  %v1085_v6 = vmul.f32 1.442695, %v1074_v4  ;;  %v1296_v4 = vld [vmem:[#allocation14 + $0x40] sm:$0xff] }
 0x37c   : > { %v1101_v7 = vsel %vm1046_vm8, %v2478_v5, 0.0 }
 0x37d   : > { %2481 = vpow2.f32 %v1085_v6  ;;  %1102 = vadd.xlane.f32.xlu1 %v1101_v7  ;;  %v1100_v8 = vpop.xlane.xlu1 %1099  ;;  %v1294_v6 = vld [vmem:[#allocation14 + $0x30] sm:$0xff]  ;;  %v1293_v7 = vld [vmem:[#allocation14 + $0x28] sm:$0xff] }
 0x37e   : > { %2483 = vrcp.f32 %v1100_v8  ;;  %v1292_v8 = vld [vmem:[#allocation14 + $0x20] sm:$0xff] }
 0x37f   : > { %v2480_v9 = vpop.eup %2479 }
 0x380   : > { %v847_v10 = vpop.permute.xlu2 %846  ;;  %v1127_v11 = vmul.f32 %v2480_v9, %v2470_v43  ;;  %v1291_v9 = vld [vmem:[#allocation14 + $0x18] sm:$0xff] }
 0x381   : > { %853 = vst.msk [vmem:[#allocation4 + $0x20] sm:$0xff] %vm788_vm7, %v847_v10  ;;  %v1290_v10 = vld [vmem:[#allocation14 + $0x10] sm:$0xff] }
 0x382   : > { %2285 = vmatmul.msk.f32.vlgmr.msrb.gmra.mxu2 %vm1046_vm8, %v1127_v11  ;;  %v1289_v11 = vld [vmem:[#allocation14 + $0x8] sm:$0xff] }
 0x383   : > { %v2482_v12 = vpop.eup %2481 }
 0x384   : > { %v1104_v13 = vsel %vm1046_vm8, %v2482_v12, 0.0  ;;  %v2484_v15 = vpop.eup %2483 }
 0x385   : > { %v1064_v16 = vpop.xlane.xlu1 %1063  ;;  %1105 = vadd.xlane.f32.xlu1 %v1104_v13  ;;  %v1128_v23 = vmul.f32 %v2484_v15, %v2472_v46 }
 0x386   : > { %v1076_v18 = vsub.f32 %v1008_v48, %v1064_v16 }
 0x388   : > { %v1089_v19 = vmul.f32 1.442695, %v1076_v18  ;;  %v876_v20 = vpop.permute.xlu2 %875  ;;  %v902_v22 = vld [vmem:[#allocation4 + $0x20] sm:$0xff] }
 0x389   : > { %881 = vst.msk [vmem:[#allocation4 + $0x38] sm:$0xff] %vm788_vm7, %v876_v20  ;;  %1214 = vmatpush.msrb.mxu3 %v902_v22 }
 0x38a   : > { %2485 = vpow2.f32 %v1089_v19  ;;  %2286 = vmatmul.msk.f32.gmra.mxu2 %vm1046_vm8, %v1128_v23 }
 0x38b   : > { %2487 = vpow2.f32 %v1093_v30 }
 0x38c   : > { %873 = vrot.lane.b32.xlu0 %v3207_v42, %s2926_s22 }
 0x390   : > { %v2486_v24 = vpop.eup %2485  ;;  %v905_v25 = vld [vmem:[#allocation4 + $0x38] sm:$0xff] }
 0x391   : > { %1242 = vmatpush.msra.mxu0 %v905_v25  ;;  %v1110_v26 = vsel %vm1046_vm8, %v2486_v24, 0.0  ;;  %v2488_v31 = vpop.eup %2487 }
 0x392   : > { %1111 = vadd.xlane.f32.xlu1 %v1110_v26  ;;  %v1116_v32 = vsel %vm1046_vm8, %v2488_v31, 0.0 }
 0x39d   : > { %v820_v27 = vpop.permute.xlu1 %819 }
 0x39e   : > { %826 = vst.msk [vmem:[#allocation4 + $0x10] sm:$0xff] %vm788_vm7, %v820_v27 }
 0x3a5   : > { %v900_v29 = vld [vmem:[#allocation4 + $0x10] sm:$0xff] }
 0x3a6   : > { %1185 = vmatpush.msra.mxu2 %v900_v29 }
 0x3b6   : > { %1117 = vadd.xlane.f32.xlu0 %v1116_v32 }
 0x3e8   : > { %v1115_v37 = vpop.xlane.xlu2 %1114 }
 0x3eb   : > { %v1109_v42 = vpop.xlane.xlu0 %1108 }
 0x3ec   : > { %2489 = vrcp.f32 %v1109_v42 }
 0x3f0   : > { %v1103_v33 = vpop.xlane.xlu1 %1102 }
 0x3f1   : > { %2491 = vrcp.f32 %v1103_v33 }
 0x3f2   : > { %v2490_v17 = vpop.eup %2489 }
 0x3f3   : > { %v1131_v34 = vmul.f32 %v2490_v17, %v2476_v62  ;;  %v1300_v62 = vld [vmem:[#allocation14 + $0x60] sm:$0xff]  ;;  %v1446_v17 = vld [vmem:[#allocation20 + $0x1e8] sm:$0xff] }
 0x3f4   : > { %1311 = vmatpush.msrb.mxu1 %v1300_v62  ;;  %1482 = vmatpush.msra.mxu3 %v1446_v17  ;;  %v1424_v62 = vld [vmem:[#allocation20 + $0x138] sm:$0xff]  ;;  %v1390_v17 = vld [vmem:[#allocation20 + $0x28] sm:$0xff] }
 0x3f5   : > { %2289 = vmatmul.msk.f32.vlgmr.msrb.gmra.mxu3 %vm1046_vm8, %v1131_v34  ;;  %v1447_v34 = vld [vmem:[#allocation20 + $0x1f0] sm:$0xff] }
 0x3f6   : > { %1312 = vmatpush.msrb.mxu1 %v1299_v63  ;;  %v1417_v63 = vld [vmem:[#allocation20 + $0x100] sm:$0xff] }
 0x3f7   : > { %v2492_v35 = vpop.eup %2491 }
 0x3f8   : > { %v1129_v36 = vmul.f32 %v2492_v35, %v2478_v5  ;;  %v1106_v38 = vpop.xlane.xlu1 %1105  ;;  %1313 = vmatpush.msrb.mxu1 %v1298_v2  ;;  %v1295_v5 = vld [vmem:[#allocation14 + $0x38] sm:$0xff]  ;;  %v1418_v2 = vld [vmem:[#allocation20 + $0x108] sm:$0xff] }
 0x3f9   : > { %2493 = vrcp.f32 %v1106_v38  ;;  %v1448_v35 = vld [vmem:[#allocation20 + $0x1f8] sm:$0xff]  ;;  %v1443_v38 = vld [vmem:[#allocation20 + $0x1d0] sm:$0xff] }
 0x3fa   : > { %2287 = vmatmul.msk.f32.vlgmr.msra.gmra.mxu2 %vm1046_vm8, %v1129_v36  ;;  %2495 = vrcp.f32 %v1115_v37  ;;  %1314 = vmatpush.msrb.mxu1 %v1297_v3  ;;  %v1442_v36 = vld [vmem:[#allocation20 + $0x1c8] sm:$0xff]  ;;  %v1444_v37 = vld [vmem:[#allocation20 + $0x1d8] sm:$0xff]  ;;  %v1419_v3 = vld [vmem:[#allocation20 + $0x110] sm:$0xff] }
 0x3fb   : > { %1483 = vmatpush.msra.mxu3 %v1442_v36  ;;  %v1386_v36 = vld [vmem:[#allocation20 + $0x8] sm:$0xff] }
 0x3fc   : > { %1315 = vmatpush.msrb.mxu1 %v1296_v4  ;;  %v1420_v4 = vld [vmem:[#allocation20 + $0x118] sm:$0xff] }
 0x3fe   : > { %v874_v39 = vpop.permute.xlu0 %873  ;;  %1316 = vmatpush.msrb.mxu1 %v1295_v5  ;;  %v1413_v5 = vld [vmem:[#allocation20 + $0xe0] sm:$0xff] }
 0x3ff   : > { %v2494_v40 = vpop.eup %2493  ;;  %880 = vst.msk [vmem:[#allocation4 + $0x30] sm:$0xff] %vm788_vm7, %v874_v39 }
 0x400   : > { %v1130_v21 = vmul.f32 %v2494_v40, %v2482_v12  ;;  %v2496_v41 = vpop.eup %2495  ;;  %1317 = vmatpush.msrb.mxu1 %v1294_v6  ;;  %v1288_v12 = vld [vmem:[#allocation14] sm:$0xff]  ;;  %v1414_v6 = vld [vmem:[#allocation20 + $0xe8] sm:$0xff] }
 0x401   : > { %v1133_v45 = vmul.f32 %v2496_v41, %v3280_v60 }
 0x402   : > { %2288 = vmatmul.msk.f32.gmra.mxu2 %vm1046_vm8, %v1130_v21  ;;  %1318 = vmatpush.msrb.mxu1 %v1293_v7  ;;  %v1415_v7 = vld [vmem:[#allocation20 + $0xf0] sm:$0xff] }
 0x404   : > { %1319 = vmatpush.msrb.mxu1 %v1292_v8  ;;  %v1416_v8 = vld [vmem:[#allocation20 + $0xf8] sm:$0xff] }
 0x405   : > { %v1158_v43 = vpop.f32.mrf.mxu2  ;;  %v1112_v44 = vpop.xlane.xlu1 %1111 }
 0x406   : > { %1251 = vst.msk [vmem:[#allocation5] sm:$0xff] %vm788_vm7, %v1158_v43  ;;  %2497 = vrcp.f32 %v1112_v44  ;;  %v904_v46 = vld [vmem:[#allocation4 + $0x30] sm:$0xff]  ;;  %1320 = vmatpush.msrb.mxu1 %v1291_v9  ;;  %v1437_v43 = vld [vmem:[#allocation20 + $0x1a0] sm:$0xff]  ;;  %v1438_v44 = vld [vmem:[#allocation20 + $0x1a8] sm:$0xff] }
 0x407   : > { %1243 = vmatpush.msra.mxu0 %v904_v46  ;;  %1484 = vmatpush.msra.mxu3 %v1438_v44  ;;  %v1440_v46 = vld [vmem:[#allocation20 + $0x1b8] sm:$0xff]  ;;  %v1409_v9 = vld [vmem:[#allocation20 + $0xc0] sm:$0xff] }
 0x408   : > { %2291 = vmatmul.msk.f32.vlgmr.msra.gmra.mxu0 %vm1046_vm8, %v1133_v45  ;;  %1321 = vmatpush.msrb.mxu1 %v1290_v10  ;;  %v1439_v45 = vld [vmem:[#allocation20 + $0x1b0] sm:$0xff]  ;;  %v1410_v10 = vld [vmem:[#allocation20 + $0xc8] sm:$0xff] }
 0x409   : > { %1505 = vmatpush.msrb.mxu0 %v1447_v34  ;;  %v1391_v34 = vld [vmem:[#allocation20 + $0x30] sm:$0xff] }
 0x40a   : > { %1322 = vmatpush.msrb.mxu1 %v1289_v11  ;;  %v1411_v11 = vld [vmem:[#allocation20 + $0xd0] sm:$0xff] }
 0x40b   : > { %1506 = vmatpush.msrb.mxu0 %v1443_v38  ;;  %v1387_v38 = vld [vmem:[#allocation20 + $0x10] sm:$0xff] }
 0x40c   : > { %v2498_v47 = vpop.eup %2497  ;;  %1323 = vmatpush.msrb.mxu1 %v1288_v12  ;;  %v1412_v12 = vld [vmem:[#allocation20 + $0xd8] sm:$0xff] }
 0x40d   : > { %v1161_v48 = vpop.f32.mrf.mxu2  ;;  %v1132_v50 = vmul.f32 %v2498_v47, %v2486_v24  ;;  %v2459_v24 = vld [vmem:[#allocation15] ss:$0 sm:$0xff]  ;;  %1507 = vmatpush.msrb.mxu0 %v1439_v45  ;;  %v1433_v47 = vld [vmem:[#allocation20 + $0x180] sm:$0xff] }
 0x40e   : > { %1252 = vst.msk [vmem:[#allocation5 + $0x8] sm:$0xff] %vm788_vm7, %v1161_v48  ;;  %1528 = vmatpush.msra.mxu1 %v1448_v35  ;;  %v1434_v48 = vld [vmem:[#allocation20 + $0x188] sm:$0xff]  ;;  %v1392_v35 = vld [vmem:[#allocation20 + $0x38] sm:$0xff] }
 0x40f   : > { %2290 = vmatmul.msk.f32.gmra.mxu3 %vm1046_vm8, %v1132_v50  ;;  %v1435_v50 = vld [vmem:[#allocation20 + $0x190] sm:$0xff] }
 0x410   : > { %1529 = vmatpush.msra.mxu1 %v1444_v37  ;;  %1485 = vmatpush.msra.mxu3 %v1434_v48  ;;  %v1388_v37 = vld [vmem:[#allocation20 + $0x18] sm:$0xff] }
 0x411   : > { %1508 = vmatpush.msrb.mxu0 %v1435_v50  ;;  %v2460_v50 = vld [vmem:[#allocation17] ss:$0 sm:$0xff] }
 0x412   : > { %1530 = vmatpush.msra.mxu1 %v1440_v46 }
 0x429   : > { %v1118_v51 = vpop.xlane.xlu0 %1117 }
 0x42a   : > { %2499 = vrcp.f32 %v1118_v51  ;;  %v1436_v51 = vld [vmem:[#allocation20 + $0x198] sm:$0xff] }
 0x42b   : > { %1531 = vmatpush.msra.mxu1 %v1436_v51 }
 0x430   : > { %v2500_v52 = vpop.eup %2499 }
 0x431   : > { %v1134_v53 = vmul.f32 %v2500_v52, %v2488_v31  ;;  %v1429_v52 = vld [vmem:[#allocation20 + $0x160] sm:$0xff] }
 0x433   : > { %2292 = vmatmul.msk.f32.gmra.mxu0 %vm1046_vm8, %v1134_v53  ;;  %v1430_v53 = vld [vmem:[#allocation20 + $0x168] sm:$0xff] }
 0x434   : > { %1486 = vmatpush.msra.mxu3 %v1430_v53  ;;  %v2461_v53 = vld [vmem:[#allocation18] ss:$0 sm:$0xff] }
 0x478   : > { %v1216_v54 = vpop.f32.mrf.mxu3 }
 0x479   : > { %1266 = vrot.lane.b32.xlu1 %v1216_v54, %s2927_s1  ;;  %v1431_v54 = vld [vmem:[#allocation20 + $0x170] sm:$0xff] }
 0x47a   : > { %1509 = vmatpush.msrb.mxu0 %v1431_v54 }
 0x47c   : > { %1510 = vmatpush.msrb.mxu0 %v1427_v58 }
 0x47d   : > { %v1187_v55 = vpop.f32.mrf.mxu2 }
 0x47e   : > { %1255 = vrot.lane.b32.xlu2 %v1187_v55, %s2926_s22  ;;  %v1432_v55 = vld [vmem:[#allocation20 + $0x178] sm:$0xff]  ;;  %1511 = vmatpush.msrb.mxu0 %v1423_v49 }
 0x47f   : > { %1532 = vmatpush.msra.mxu1 %v1432_v55 }
 0x480   : > { %1512 = vmatpush.msrb.mxu0 %v1419_v3 }
 0x481   : > { %1533 = vmatpush.msra.mxu1 %v1428_v59 }
 0x482   : > { %1513 = vmatpush.msrb.mxu0 %v1415_v7 }
 0x483   : > { %1534 = vmatpush.msra.mxu1 %v1424_v62 }
 0x484   : > { %1514 = vmatpush.msrb.mxu0 %v1411_v11 }
 0x485   : > { %v1190_v56 = vpop.f32.mrf.mxu2  ;;  %v1245_v57 = vpop.f32.mrf.mxu0  ;;  %1535 = vmatpush.msra.mxu1 %v1420_v4 }
 0x486   : > { %1257 = vrot.lane.b32.xlu1 %v1190_v56, %s2926_s22  ;;  %1277 = vrot.lane.b32.xlu2 %v1245_v57, %s2925_s19  ;;  %v1425_v56 = vld [vmem:[#allocation20 + $0x140] sm:$0xff]  ;;  %v1426_v57 = vld [vmem:[#allocation20 + $0x148] sm:$0xff] }
 0x487   : > { %1487 = vmatpush.msra.mxu3 %v1426_v57  ;;  %1536 = vmatpush.msra.mxu1 %v1416_v8 }
 0x489   : > { %1537 = vmatpush.msra.mxu1 %v1412_v12 }
 0x492   : > { %v1219_v60 = vpop.f32.mrf.mxu3 }
 0x493   : > { %1268 = vrot.lane.b32.xlu2 %v1219_v60, %s2927_s1  ;;  %v1421_v60 = vld [vmem:[#allocation20 + $0x120] sm:$0xff]  ;;  %s2080_s1 = sshll.u32 %s599_s5, 4  ;;  %s2081_s1 = int_to_ptr.vmem [resolvable:$true] %s2080_s1 }
 0x4b0   : > { %v1248_v61 = vpop.f32.mrf.mxu0 }
 0x4b1   : > { %1279 = vrot.lane.b32.xlu1 %v1248_v61, %s2925_s19  ;;  %v1422_v61 = vld [vmem:[#allocation20 + $0x128] sm:$0xff]  ;;  %s3663_s19 = sld [smem:[#allocation37_spill]] }
 0x4b2   : > { %1488 = vmatpush.msra.mxu3 %v1422_v61 }
 0x4b4   : > { %1489 = vmatpush.msra.mxu3 %v1418_v2 }
 0x4b6   : > { %1490 = vmatpush.msra.mxu3 %v1414_v6 }
 0x4b7   : > { %s2079_s22 = scalar_lea.hbm %s3663_s19, %s2307_s23  ;;  %s2841_s13 = scalar_lea.hbm %s3663_s19, 32 }
 0x4b8   : > { %1491 = vmatpush.msra.mxu3 %v1410_v10  ;;  %v1966_v10 = vld [vmem:[#allocation21 + $0x1f8] sm:$0xff]  ;;  %s2082_s21 = sshll.u32 %s2079_s22, 4  ;;  %s2083_s21 = int_to_ptr.hbm [resolvable:$true] %s2082_s21 }
 0x4b9   : > { %s2835_s15 = sshra.s32 %s2083_s21, 4  ;;  %s2836_s15 = int_to_ptr.hbm [resolvable:$true] %s2835_s15 }
 0x4ba   : > { %s2837_s17 = scalar_lea.hbm %s2836_s15, 16  ;;  %p2842_p12 = scmp.lt.s32.totalorder %s2836_s15, %s3663_s19 }
 0x4bb   : > { %p2838_p1 = scmp.ne.s32.totalorder %s2836_s15, %s2837_s17  ;;  %p2843_p8 = scmp.lt.s32.totalorder %s2841_s13, %s2837_s17 }
 0x4bd   : > { %p2839_p3 = pnand %p2838_p1, %p3112_p13  ;;  %p2844_p7 = por %p2843_p8, %p2842_p12 }
 0x4bf   : > { %p2840_p4 = pneg %p2839_p3 }
 0x4c1   : > { %p2845_p9 = pnand %p2844_p7, %p2840_p4 }
 0x4d8   : > { %v1256_v13 = vpop.permute.xlu2 %1255 }
 0x4d9   : > { %1262 = vst.msk [vmem:[#allocation5] sm:$0xff] %vm1261_vm9, %v1256_v13  ;;  %v1405_v13 = vld [vmem:[#allocation20 + $0xa0] sm:$0xff] }
 0x4e0   : > { %v1278_v16 = vpop.permute.xlu2 %1277 }
 0x4eb   : > { %v1267_v15 = vpop.permute.xlu1 %1266 }
 0x4ec   : > { %1273 = vst.msk [vmem:[#allocation5] sm:$0xff] %vm1272_vm10, %v1267_v15  ;;  %v1406_v15 = vld [vmem:[#allocation20 + $0xa8] sm:$0xff] }
 0x4ed   : > { %1284 = vst.msk [vmem:[#allocation5] sm:$0xff] %vm1283_vm11, %v1278_v16  ;;  %v1269_v20 = vpop.permute.xlu2 %1268  ;;  %v1407_v16 = vld [vmem:[#allocation20 + $0xb0] sm:$0xff]  ;;  %1492 = vmatpush.msra.mxu3 %v1406_v15 }
 0x4ee   : > { %1515 = vmatpush.msrb.mxu0 %v1407_v16  ;;  %v1949_v15 = vld [vmem:[#allocation21 + $0x170] sm:$0xff] }
 0x4ef   : > { %v1965_v16 = vld [vmem:[#allocation21 + $0x1f0] sm:$0xff] }
 0x4f4   : > { %v1286_v18 = vld [vmem:[#allocation5] sm:$0xff] }
 0x4f5   : > { %1324 = vmatmul.f32.vlgmr.msrb.gmra.mxu1 %v1286_v18  ;;  %v1408_v18 = vld [vmem:[#allocation20 + $0xb8] sm:$0xff] }
 0x4f6   : > { %1538 = vmatpush.msra.mxu1 %v1408_v18 }
 0x4f8   : > { %v1258_v19 = vpop.permute.xlu1 %1257 }
 0x4f9   : > { %1263 = vst.msk [vmem:[#allocation5 + $0x8] sm:$0xff] %vm1261_vm9, %v1258_v19  ;;  %v1401_v19 = vld [vmem:[#allocation20 + $0x80] sm:$0xff] }
 0x4fa   : > { %1274 = vst.msk [vmem:[#allocation5 + $0x8] sm:$0xff] %vm1272_vm10, %v1269_v20  ;;  %v1402_v20 = vld [vmem:[#allocation20 + $0x88] sm:$0xff] }
 0x4fb   : > { %1493 = vmatpush.msra.mxu3 %v1402_v20  ;;  %v1948_v20 = vld [vmem:[#allocation21 + $0x168] sm:$0xff] }
 0x523   : > { %v1280_v22 = vpop.permute.xlu1 %1279 }
 0x524   : > { %1285 = vst.msk [vmem:[#allocation5 + $0x8] sm:$0xff] %vm1283_vm11, %v1280_v22  ;;  %v1403_v22 = vld [vmem:[#allocation20 + $0x90] sm:$0xff] }
 0x525   : > { %1516 = vmatpush.msrb.mxu0 %v1403_v22  ;;  %v1964_v22 = vld [vmem:[#allocation21 + $0x1e8] sm:$0xff] }
 0x52b   : > { %v1287_v23 = vld [vmem:[#allocation5 + $0x8] sm:$0xff] }
 0x52c   : > { %1327 = vmatmul.f32.gmra.mxu1 %v1287_v23  ;;  %v1404_v23 = vld [vmem:[#allocation20 + $0x98] sm:$0xff] }
 0x52d   : > { %1539 = vmatpush.msra.mxu1 %v1404_v23 }
 0x572   : > { %v1325_v25 = vpop.f32.mrf.mxu1 }
 0x573   : > { %v1326_v26 = vadd.f32 %v2459_v24, %v1325_v25  ;;  %v1398_v25 = vld [vmem:[#allocation20 + $0x68] sm:$0xff] }
 0x574   : > { %1494 = vmatpush.msra.mxu3 %v1398_v25 }
 0x575   : > { %v3314_v27 = vadd.f32 %v1326_v26, %v3176_v0  ;;  %v1445_v0 = vld [vmem:[#allocation20 + $0x1e0] sm:$0xff]  ;;  %v1399_v26 = vld [vmem:[#allocation20 + $0x70] sm:$0xff] }
 0x576   : > { %1459 = vmatpush.msrb.mxu2 %v1445_v0  ;;  %1517 = vmatpush.msrb.mxu0 %v1399_v26  ;;  %v1389_v0 = vld [vmem:[#allocation20 + $0x20] sm:$0xff] }
 0x577   : > { %1335 = vadd.xlane.f32.xlu0 %v3314_v27 }
 0x5a9   : > { %v1328_v28 = vpop.f32.mrf.mxu1 }
 0x5aa   : > { %v1329_v29 = vadd.f32 %v2459_v24, %v1328_v28  ;;  %v1397_v24 = vld [vmem:[#allocation20 + $0x60] sm:$0xff]  ;;  %v1400_v28 = vld [vmem:[#allocation20 + $0x78] sm:$0xff] }
 0x5ab   : > { %1540 = vmatpush.msra.mxu1 %v1400_v28 }
 0x5ac   : > { %v3318_v30 = vadd.f32 %v1329_v29, %v3179_v1  ;;  %v1441_v1 = vld [vmem:[#allocation20 + $0x1c0] sm:$0xff] }
 0x5ad   : > { %1460 = vmatpush.msrb.mxu2 %v1441_v1  ;;  %v1393_v29 = vld [vmem:[#allocation20 + $0x40] sm:$0xff] }
 0x5ae   : > { %1337 = vadd.xlane.f32.xlu2 %v3318_v30  ;;  %v1385_v1 = vld [vmem:[#allocation20] sm:$0xff] }
 0x5af   : > { %1461 = vmatpush.msrb.mxu2 %v1437_v43 }
 0x5b1   : > { %1462 = vmatpush.msrb.mxu2 %v1433_v47 }
 0x5b3   : > { %1463 = vmatpush.msrb.mxu2 %v1429_v52 }
 0x5b5   : > { %1464 = vmatpush.msrb.mxu2 %v1425_v56 }
 0x5b7   : > { %1465 = vmatpush.msrb.mxu2 %v1421_v60 }
 0x5b9   : > { %1466 = vmatpush.msrb.mxu2 %v1417_v63 }
 0x5bb   : > { %1467 = vmatpush.msrb.mxu2 %v1413_v5 }
 0x5bd   : > { %1468 = vmatpush.msrb.mxu2 %v1409_v9  ;;  %v1950_v9 = vld [vmem:[#allocation21 + $0x178] sm:$0xff] }
 0x5bf   : > { %1469 = vmatpush.msrb.mxu2 %v1405_v13 }
 0x5c1   : > { %1470 = vmatpush.msrb.mxu2 %v1401_v19 }
 0x5c3   : > { %1471 = vmatpush.msrb.mxu2 %v1397_v24 }
 0x5c5   : > { %1472 = vmatpush.msrb.mxu2 %v1393_v29 }
 0x5c7   : > { %1473 = vmatpush.msrb.mxu2 %v1389_v0 }
 0x5c9   : > { %1474 = vmatpush.msrb.mxu2 %v1385_v1 }
 0x5ea   : > { %v1336_v31 = vpop.xlane.xlu0 %1335 }
 0x5eb   : > { %v1339_v32 = vmul.f32 %v1336_v31, %v3182_v14  ;;  %v1394_v31 = vld [vmem:[#allocation20 + $0x48] sm:$0xff] }
 0x5ec   : > { %1495 = vmatpush.msra.mxu3 %v1394_v31  ;;  %v1918_v31 = vld [vmem:[#allocation21 + $0x78] sm:$0xff] }
 0x5ed   : > { %v3323_v42 = vsub.f32 %v3314_v27, %v1339_v32  ;;  %v1395_v32 = vld [vmem:[#allocation20 + $0x50] sm:$0xff]  ;;  %1971 = vmatpush.msra.mxu2 %v1918_v31 }
 0x5ee   : > { %1518 = vmatpush.msrb.mxu0 %v1395_v32  ;;  %1496 = vmatpush.msra.mxu3 %v1390_v17  ;;  %v1934_v32 = vld [vmem:[#allocation21 + $0xf8] sm:$0xff] }
 0x5ef   : > { %v1343_v33 = vmul.f32 %v3323_v42, %v3323_v42 }
 0x5f0   : > { %1519 = vmatpush.msrb.mxu0 %v1391_v34  ;;  %1497 = vmatpush.msra.mxu3 %v1386_v36  ;;  %v1963_v34 = vld [vmem:[#allocation21 + $0x1e0] sm:$0xff] }
 0x5f1   : > { %1345 = vadd.xlane.f32.xlu1 %v1343_v33  ;;  %v1396_v33 = vld [vmem:[#allocation20 + $0x58] sm:$0xff] }
 0x5f2   : > { %1541 = vmatpush.msra.mxu1 %v1396_v33  ;;  %1520 = vmatpush.msrb.mxu0 %v1387_v38  ;;  %v1947_v33 = vld [vmem:[#allocation21 + $0x160] sm:$0xff] }
 0x5f3   : > { %1994 = vmatpush.msrb.mxu3 %v1934_v32  ;;  %v1960_v32 = vld [vmem:[#allocation21 + $0x1c8] sm:$0xff] }
 0x5f4   : > { %1542 = vmatpush.msra.mxu1 %v1392_v35  ;;  %2017 = vmatpush.msra.mxu0 %v1950_v9 }
 0x5f6   : > { %1543 = vmatpush.msra.mxu1 %v1388_v37  ;;  %2018 = vmatpush.msra.mxu0 %v1949_v15 }
 0x5f8   : > { %2040 = vmatpush.msrb.mxu1 %v1966_v10  ;;  %2019 = vmatpush.msra.mxu0 %v1948_v20  ;;  %v1915_v20 = vld [vmem:[#allocation21 + $0x60] sm:$0xff] }
 0x5fa   : > { %2041 = vmatpush.msrb.mxu1 %v1965_v16  ;;  %2020 = vmatpush.msra.mxu0 %v1947_v33  ;;  %v1914_v33 = vld [vmem:[#allocation21 + $0x58] sm:$0xff] }
 0x5fc   : > { %2042 = vmatpush.msrb.mxu1 %v1964_v22  ;;  %v1931_v22 = vld [vmem:[#allocation21 + $0xe0] sm:$0xff] }
 0x5fe   : > { %2043 = vmatpush.msrb.mxu1 %v1963_v34  ;;  %v1930_v34 = vld [vmem:[#allocation21 + $0xd8] sm:$0xff] }
 0x621   : > { %v1338_v39 = vpop.xlane.xlu2 %1337 }
 0x622   : > { %v1340_v40 = vmul.f32 %v1338_v39, %v3182_v14 }
 0x624   : > { %v3329_v21 = vsub.f32 %v3318_v30, %v1340_v40 }
 0x626   : > { %v1344_v41 = vmul.f32 %v3329_v21, %v3329_v21 }
 0x628   : > { %1347 = vadd.xlane.f32.xlu0 %v1344_v41 }
 0x664   : > { %v1346_v39 = vpop.xlane.xlu1 %1345 }
 0x665   : > { %v1349_v40 = vmul.f32 %v1346_v39, %v3182_v14 }
 0x667   : > { %v1351_v41 = vadd.f32 1e-05, %v1349_v40 }
 0x669   : > { %2501 = vrsqrt.f32 %v1351_v41  ;;  %vm1359_vm13 = vweird.f32 %v1351_v41 }
 0x66f   : > { %v2502_v43 = vpop.eup %2501 }
 0x670   : > { %v1354_v44 = vmul.f32 %v2502_v43, %v1351_v41  ;;  %vm1360_vm12 = vweird.f32 %v2502_v43 }
 0x671   : > { %vm1361_vm14 = vmor %vm1359_vm13, %vm1360_vm12 }
 0x672   : > { %v1355_v45 = vmul.f32 %v2502_v43, %v1354_v44  ;;  %v1933_v44 = vld [vmem:[#allocation21 + $0xf0] sm:$0xff] }
 0x673   : > { %1995 = vmatpush.msrb.mxu3 %v1933_v44 }
 0x674   : > { %v1356_v46 = vmul.f32 0.5, %v1355_v45  ;;  %v1946_v45 = vld [vmem:[#allocation21 + $0x158] sm:$0xff] }
 0x675   : > { %2021 = vmatpush.msra.mxu0 %v1946_v45 }
 0x676   : > { %v1357_v47 = vsub.f32 1.5, %v1356_v46 }
 0x678   : > { %v1358_v48 = vmul.f32 %v2502_v43, %v1357_v47 }
 0x67a   : > { %v1362_v51 = vsel %vm1361_vm14, %v2502_v43, %v1358_v48  ;;  %v1917_v43 = vld [vmem:[#allocation21 + $0x70] sm:$0xff] }
 0x67b   : > { %v1373_v52 = vmul.f32 %v1362_v51, %v3323_v42  ;;  %1972 = vmatpush.msra.mxu2 %v1917_v43 }
 0x67d   : > { %v1378_v54 = vmul.f32 %v2460_v50, %v1373_v52 }
 0x67f   : > { %v1383_v55 = vadd.f32 %v2461_v53, %v1378_v54  ;;  %v1916_v54 = vld [vmem:[#allocation21 + $0x68] sm:$0xff] }
 0x680   : > { %1973 = vmatpush.msra.mxu2 %v1916_v54 }
 0x681   : > { %1475 = vmatmul.f32.vlgmr.msrb.gmra.mxu2 %v1383_v55  ;;  %1498 = vmatmul.f32.vlgmr.msra.gmra.mxu3 %v1383_v55 }
 0x682   : > { %1521 = vmatmul.f32.vlgmr.msrb.gmra.mxu0 %v1383_v55  ;;  %1544 = vmatmul.f32.vlgmr.msra.gmra.mxu1 %v1383_v55 }
 0x683   : > { %1974 = vmatpush.msra.mxu2 %v1915_v20  ;;  %v1927_v20 = vld [vmem:[#allocation21 + $0xc0] sm:$0xff] }
 0x685   : > { %1975 = vmatpush.msra.mxu2 %v1914_v33 }
 0x69b   : > { %v1348_v56 = vpop.xlane.xlu0 %1347 }
 0x69c   : > { %v1350_v57 = vmul.f32 %v1348_v56, %v3182_v14  ;;  %v3340_v14 = vld [vmem:[%s3661_s14] sm:$0xf] }
 0x69d   : > { %v1453_v5 = vperm.slane %v3340_v14, 2  ;;  %v1454_v6 = vperm.slane %v3340_v14, 3  ;;  %v1451_v12 = vperm.slane %v3340_v14, 0  ;;  %v1452_v13 = vperm.slane %v3340_v14, 1 }
 0x69e   : > { %v1352_v58 = vadd.f32 1e-05, %v1350_v57 }
 0x6a0   : > { %2503 = vrsqrt.f32 %v1352_v58  ;;  %vm1369_vm0 = vweird.f32 %v1352_v58 }
 0x6a6   : > { %v2504_v59 = vpop.eup %2503 }
 0x6a7   : > { %v1364_v60 = vmul.f32 %v2504_v59, %v1352_v58  ;;  %vm1370_vm15 = vweird.f32 %v2504_v59  ;;  %v1932_v58 = vld [vmem:[#allocation21 + $0xe8] sm:$0xff] }
 0x6a8   : > { %vm1371_vm1 = vmor %vm1369_vm0, %vm1370_vm15  ;;  %1996 = vmatpush.msrb.mxu3 %v1932_v58 }
 0x6a9   : > { %v1365_v61 = vmul.f32 %v2504_v59, %v1364_v60  ;;  %v1961_v60 = vld [vmem:[#allocation21 + $0x1d0] sm:$0xff] }
 0x6aa   : > { %1997 = vmatpush.msrb.mxu3 %v1931_v22 }
 0x6ab   : > { %v1366_v49 = vmul.f32 0.5, %v1365_v61 }
 0x6ac   : > { %1998 = vmatpush.msrb.mxu3 %v1930_v34  ;;  %v1910_v34 = vld [vmem:[#allocation21 + $0x38] sm:$0xff] }
 0x6ad   : > { %v1367_v62 = vsub.f32 1.5, %v1366_v49 }
 0x6af   : > { %v1368_v63 = vmul.f32 %v2504_v59, %v1367_v62 }
 0x6b1   : > { %v1372_v42 = vsel %vm1371_vm1, %v2504_v59, %v1368_v63  ;;  %v1945_v59 = vld [vmem:[#allocation21 + $0x150] sm:$0xff] }
 0x6b2   : > { %v1374_v2 = vmul.f32 %v1372_v42, %v3329_v21  ;;  %2022 = vmatpush.msra.mxu0 %v1945_v59 }
 0x6b4   : > { %v1379_v3 = vmul.f32 %v2460_v50, %v1374_v2 }
 0x6b6   : > { %v1384_v4 = vadd.f32 %v2461_v53, %v1379_v3  ;;  %v1962_v53 = vld [vmem:[#allocation21 + $0x1d8] sm:$0xff] }
 0x6b7   : > { %2044 = vmatpush.msrb.mxu1 %v1962_v53 }
 0x6b8   : > { %1478 = vmatmul.f32.gmra.mxu2 %v1384_v4  ;;  %1501 = vmatmul.f32.gmra.mxu3 %v1384_v4 }
 0x6b9   : > { %1524 = vmatmul.f32.gmra.mxu0 %v1384_v4  ;;  %1547 = vmatmul.f32.gmra.mxu1 %v1384_v4 }
 0x6ba   : > { %2045 = vmatpush.msrb.mxu1 %v1961_v60 }
 0x6bc   : > { %2046 = vmatpush.msrb.mxu1 %v1960_v32 }
 0x6ff   : > { %v1522_v7 = vpop.f32.mrf.mxu0  ;;  %v1545_v8 = vpop.f32.mrf.mxu1 }
 0x700   : > { %v3346_v21 = vadd.f32 %v1522_v7, %v1453_v5  ;;  %v3350_v11 = vadd.f32 %v1545_v8, %v1454_v6 }
 0x702   : > { %v3355_v18 = vmul.f32 0.70710677, %v3346_v21  ;;  %v3358_v19 = vmul.f32 0.70710677, %v3350_v11 }
 0x704   : > { %v1647_v23 = vmul.f32 %v3355_v18, %v3355_v18  ;;  %v1687_v24 = vmul.f32 %v3358_v19, %v3358_v19  ;;  %v1476_v25 = vpop.f32.mrf.mxu2  ;;  %v1499_v26 = vpop.f32.mrf.mxu3 }
 0x705   : > { %v3366_v28 = vadd.f32 %v1476_v25, %v1451_v12  ;;  %v3370_v29 = vadd.f32 %v1499_v26, %v1452_v13 }
 0x706   : > { %v3372_v0 = vmin.f32 %v1647_v23, 16.0  ;;  %v3374_v17 = vmin.f32 %v1687_v24, 16.0  ;;  %v1944_v23 = vld [vmem:[#allocation21 + $0x148] sm:$0xff] }
 0x707   : > { %v3377_v35 = vmul.f32 0.70710677, %v3366_v28  ;;  %v3380_v1 = vmul.f32 0.70710677, %v3370_v29  ;;  %2023 = vmatpush.msra.mxu0 %v1944_v23  ;;  %v1940_v23 = vld [vmem:[#allocation21 + $0x128] sm:$0xff] }
 0x708   : > { %v1649_v36 = vmul.f32 2.1237322e-06, %v3372_v0  ;;  %v1660_v38 = vmul.f32 3.8918573e-05, %v3372_v0  ;;  %v1689_v37 = vmul.f32 2.1237322e-06, %v3374_v17 }
 0x709   : > { %v1700_v39 = vmul.f32 3.8918573e-05, %v3374_v17  ;;  %v1567_v40 = vmul.f32 %v3377_v35, %v3377_v35  ;;  %v1607_v41 = vmul.f32 %v3380_v1, %v3380_v1 }
 0x70a   : > { %v1650_v46 = vadd.f32 0.00028619796, %v1649_v36  ;;  %v1661_v47 = vadd.f32 0.001143296, %v1660_v38  ;;  %v1690_v48 = vadd.f32 0.00028619796, %v1689_v37 }
 0x70b   : > { %v1701_v50 = vadd.f32 0.001143296, %v1700_v39  ;;  %v3390_v51 = vmin.f32 %v1567_v40, 16.0  ;;  %v3392_v52 = vmin.f32 %v1607_v41, 16.0 }
 0x70c   : > { %v1651_v55 = vmul.f32 %v1650_v46, %v3372_v0  ;;  %v1662_v56 = vmul.f32 %v1661_v47, %v3372_v0  ;;  %v1691_v57 = vmul.f32 %v1690_v48, %v3374_v17  ;;  %v1943_v46 = vld [vmem:[#allocation21 + $0x140] sm:$0xff]  ;;  %v1913_v48 = vld [vmem:[#allocation21 + $0x50] sm:$0xff] }
 0x70d   : > { %v1702_v61 = vmul.f32 %v1701_v50, %v3374_v17  ;;  %v1569_v49 = vmul.f32 2.1237322e-06, %v3390_v51  ;;  %v1580_v62 = vmul.f32 3.8918573e-05, %v3390_v51  ;;  %v1609_v63 = vmul.f32 2.1237322e-06, %v3392_v52  ;;  %2024 = vmatpush.msra.mxu0 %v1943_v46  ;;  %1976 = vmatpush.msra.mxu2 %v1913_v48 }
 0x70e   : > { %v1652_v42 = vadd.f32 0.0036580483, %v1651_v55  ;;  %v1663_v2 = vadd.f32 0.014752088, %v1662_v56  ;;  %v1692_v3 = vadd.f32 0.0036580483, %v1691_v57 }
 0x70f   : > { %v1703_v4 = vadd.f32 0.014752088, %v1702_v61  ;;  %v1570_v7 = vadd.f32 0.00028619796, %v1569_v49  ;;  %v1581_v8 = vadd.f32 0.001143296, %v1580_v62 }
 0x710   : > { %v1653_v9 = vmul.f32 %v1652_v42, %v3372_v0  ;;  %v1664_v10 = vmul.f32 %v1663_v2, %v3372_v0  ;;  %v1693_v15 = vmul.f32 %v1692_v3, %v3374_v17  ;;  %v1610_v16 = vadd.f32 0.00028619796, %v1609_v63  ;;  %v1959_v47 = vld [vmem:[#allocation21 + $0x1c0] sm:$0xff]  ;;  %v1929_v55 = vld [vmem:[#allocation21 + $0xd0] sm:$0xff]  ;;  %v1942_v56 = vld [vmem:[#allocation21 + $0x138] sm:$0xff] }
 0x711   : > { %v1704_v24 = vmul.f32 %v1703_v4, %v3374_v17  ;;  %v1571_v25 = vmul.f32 %v1570_v7, %v3390_v51  ;;  %v1582_v26 = vmul.f32 %v1581_v8, %v3390_v51  ;;  %v1620_v31 = vmul.f32 3.8918573e-05, %v3392_v52  ;;  %2047 = vmatpush.msrb.mxu1 %v1959_v47  ;;  %v1958_v57 = vld [vmem:[#allocation21 + $0x1b8] sm:$0xff]  ;;  %1999 = vmatpush.msrb.mxu3 %v1929_v55  ;;  %v1912_v2 = vld [vmem:[#allocation21 + $0x48] sm:$0xff]  ;;  %v1941_v4 = vld [vmem:[#allocation21 + $0x130] sm:$0xff] }
 0x712   : > { %v1654_v36 = vadd.f32 0.05243302, %v1653_v9  ;;  %v1665_v38 = vadd.f32 0.112945676, %v1664_v10  ;;  %v1694_v37 = vadd.f32 0.05243302, %v1693_v15  ;;  %v1611_v41 = vmul.f32 %v1610_v16, %v3392_v52  ;;  %2025 = vmatpush.msra.mxu0 %v1942_v56  ;;  %1977 = vmatpush.msra.mxu2 %v1912_v2 }
 0x713   : > { %v1705_v39 = vadd.f32 0.112945676, %v1704_v24  ;;  %v1583_v40 = vadd.f32 0.014752088, %v1582_v26  ;;  %v1572_v45 = vadd.f32 0.0036580483, %v1571_v25  ;;  %2048 = vmatpush.msrb.mxu1 %v1958_v57 }
 0x714   : > { %v1655_v43 = vmul.f32 %v1654_v36, %v3372_v0  ;;  %v1666_v44 = vmul.f32 %v1665_v38, %v3372_v0  ;;  %v1621_v54 = vadd.f32 0.001143296, %v1620_v31  ;;  %v1612_v61 = vadd.f32 0.0036580483, %v1611_v41  ;;  %v1928_v3 = vld [vmem:[#allocation21 + $0xc8] sm:$0xff]  ;;  %v1957_v15 = vld [vmem:[#allocation21 + $0x1b0] sm:$0xff]  ;;  %2026 = vmatpush.msra.mxu0 %v1941_v4 }
 0x715   : > { %v1706_v50 = vmul.f32 %v1705_v39, %v3374_v17  ;;  %v1584_v53 = vmul.f32 %v1583_v40, %v3390_v51  ;;  %v1695_v42 = vmul.f32 %v1694_v37, %v3374_v17  ;;  %v1573_v8 = vmul.f32 %v1572_v45, %v3390_v51  ;;  %2000 = vmatpush.msrb.mxu3 %v1928_v3  ;;  %v1911_v16 = vld [vmem:[#allocation21 + $0x40] sm:$0xff]  ;;  %v1956_v31 = vld [vmem:[#allocation21 + $0x1a8] sm:$0xff]  ;;  %v1926_v36 = vld [vmem:[#allocation21 + $0xb8] sm:$0xff] }
 0x716   : > { %v1667_v58 = vadd.f32 0.4994258, %v1666_v44  ;;  %v1622_v49 = vmul.f32 %v1621_v54, %v3392_v52  ;;  %v1656_v62 = vadd.f32 0.18741608, %v1655_v43  ;;  %2049 = vmatpush.msrb.mxu1 %v1957_v15  ;;  %1978 = vmatpush.msra.mxu2 %v1911_v16  ;;  %v1613_v33 = vmul.f32 %v1612_v61, %v3392_v52  ;;  %v1939_v38 = vld [vmem:[#allocation21 + $0x120] sm:$0xff]  ;;  %v1909_v41 = vld [vmem:[#allocation21 + $0x30] sm:$0xff] }
 0x717   : > { %v1707_v59 = vadd.f32 0.4994258, %v1706_v50  ;;  %v1585_v60 = vadd.f32 0.112945676, %v1584_v53  ;;  %2001 = vmatpush.msrb.mxu3 %v1927_v20  ;;  %v1696_v32 = vadd.f32 0.18741608, %v1695_v42  ;;  %2027 = vmatpush.msra.mxu0 %v1940_v23 }
 0x718   : > { %v1668_v63 = vmul.f32 %v1667_v58, %v3372_v0  ;;  %v1623_v10 = vadd.f32 0.014752088, %v1622_v49  ;;  %2050 = vmatpush.msrb.mxu1 %v1956_v31  ;;  %v1657_v37 = vmul.f32 %v1656_v62, %v3372_v0  ;;  %v1574_v39 = vadd.f32 0.05243302, %v1573_v8  ;;  %1979 = vmatpush.msra.mxu2 %v1910_v34  ;;  %v1955_v40 = vld [vmem:[#allocation21 + $0x1a0] sm:$0xff]  ;;  %v1925_v43 = vld [vmem:[#allocation21 + $0xb0] sm:$0xff] }
 0x719   : > { %v1708_v7 = vmul.f32 %v1707_v59, %v3374_v17  ;;  %v1586_v9 = vmul.f32 %v1585_v60, %v3390_v51  ;;  %2002 = vmatpush.msrb.mxu3 %v1926_v36  ;;  %2028 = vmatpush.msra.mxu0 %v1939_v38  ;;  %v1938_v44 = vld [vmem:[#allocation21 + $0x118] sm:$0xff]  ;;  %v1908_v48 = vld [vmem:[#allocation21 + $0x28] sm:$0xff]  ;;  %v1697_v0 = vmul.f32 %v1696_v32, %v3374_v17  ;;  %v1614_v50 = vadd.f32 0.05243302, %v1613_v33  ;;  %v1937_v54 = vld [vmem:[#allocation21 + $0x110] sm:$0xff] }
 0x71a   : > { %v3419_v22 = vadd.f32 1.0, %v1668_v63  ;;  %v1624_v26 = vmul.f32 %v1623_v10, %v3392_v52  ;;  %2051 = vmatpush.msrb.mxu1 %v1955_v40  ;;  %v1954_v45 = vld [vmem:[#allocation21 + $0x198] sm:$0xff]  ;;  %1980 = vmatpush.msra.mxu2 %v1909_v41  ;;  %v1924_v53 = vld [vmem:[#allocation21 + $0xa8] sm:$0xff]  ;;  %v1658_v55 = vadd.f32 1.1283791, %v1657_v37  ;;  %v1575_v56 = vmul.f32 %v1574_v39, %v3390_v51  ;;  %v1953_v59 = vld [vmem:[#allocation21 + $0x190] sm:$0xff] }
 0x71b   : > { %v3421_v24 = vadd.f32 1.0, %v1708_v7  ;;  %v1587_v25 = vadd.f32 0.4994258, %v1586_v9  ;;  %2003 = vmatpush.msrb.mxu3 %v1925_v43  ;;  %2029 = vmatpush.msra.mxu0 %v1938_v44  ;;  %v1907_v60 = vld [vmem:[#allocation21 + $0x20] sm:$0xff]  ;;  %v1936_v17 = vld [vmem:[#allocation21 + $0x108] sm:$0xff]  ;;  %v1906_v63 = vld [vmem:[#allocation21 + $0x18] sm:$0xff]  ;;  %v1615_v10 = vmul.f32 %v1614_v50, %v3392_v52 }
 0x71c   : > { %2505 = vrcp.f32 %v3419_v22  ;;  %v1625_v47 = vadd.f32 0.112945676, %v1624_v26  ;;  %2052 = vmatpush.msrb.mxu1 %v1954_v45  ;;  %1981 = vmatpush.msra.mxu2 %v1908_v48  ;;  %v1923_v61 = vld [vmem:[#allocation21 + $0xa0] sm:$0xff]  ;;  %v1952_v62 = vld [vmem:[#allocation21 + $0x188] sm:$0xff]  ;;  %v1922_v3 = vld [vmem:[#allocation21 + $0x98] sm:$0xff]  ;;  %v1659_v20 = vmul.f32 %v1658_v55, %v3355_v18  ;;  %vm1675_vm2 = vweird.f32 %v3419_v22 }
 0x71d   : > { %2507 = vrcp.f32 %v3421_v24  ;;  %v1588_v46 = vmul.f32 %v1587_v25, %v3390_v51  ;;  %2004 = vmatpush.msrb.mxu3 %v1924_v53  ;;  %2030 = vmatpush.msra.mxu0 %v1937_v54  ;;  %v1935_v4 = vld [vmem:[#allocation21 + $0x100] sm:$0xff]  ;;  %v1698_v8 = vadd.f32 1.1283791, %v1697_v0  ;;  %v1905_v15 = vld [vmem:[#allocation21 + $0x10] sm:$0xff]  ;;  %v1576_v25 = vadd.f32 0.18741608, %v1575_v56 }
 0x71e   : > { %v1626_v58 = vmul.f32 %v1625_v47, %v3392_v52  ;;  %2053 = vmatpush.msrb.mxu1 %v1953_v59  ;;  %1982 = vmatpush.msra.mxu2 %v1907_v60  ;;  %v1951_v7 = vld [vmem:[#allocation21 + $0x180] sm:$0xff]  ;;  %v1921_v16 = vld [vmem:[#allocation21 + $0x90] sm:$0xff]  ;;  %v1679_v31 = vand.u32 2147483647, %v3419_v22  ;;  %v1681_v32 = vand.u32 2147483648, %v3419_v22  ;;  %v1904_v34 = vld [vmem:[#allocation21 + $0x8] sm:$0xff]  ;;  %vm1715_vm5 = vweird.f32 %v3421_v24 }
 0x71f   : > { %v3431_v57 = vadd.f32 1.0, %v1588_v46  ;;  %2005 = vmatpush.msrb.mxu3 %v1923_v61  ;;  %2031 = vmatpush.msra.mxu0 %v1936_v17  ;;  %v1920_v36 = vld [vmem:[#allocation21 + $0x88] sm:$0xff]  ;;  %v1721_v18 = vand.u32 2147483648, %v3421_v24  ;;  %v1699_v39 = vmul.f32 %v1698_v8, %v3358_v19  ;;  %v1719_v41 = vand.u32 2147483647, %v3421_v24  ;;  %v1903_v43 = vld [vmem:[#allocation21] sm:$0xff] }
 0x720   : > { %2054 = vmatpush.msrb.mxu1 %v1952_v62  ;;  %v1627_v26 = vadd.f32 0.4994258, %v1626_v58  ;;  %1983 = vmatpush.msra.mxu2 %v1906_v63  ;;  %v1919_v44 = vld [vmem:[#allocation21 + $0x80] sm:$0xff]  ;;  %v1577_v47 = vmul.f32 %v1576_v25, %v3390_v51  ;;  %vm1680_vm7 = vcmp.eq.f32.partialorder %v1679_v31, 8.507059e+37  ;;  %v1682_v19 = vor.u32 1.1754944e-38, %v1681_v32 }
 0x721   : > { %2509 = vrcp.f32 %v3431_v57  ;;  %2006 = vmatpush.msrb.mxu3 %v1922_v3  ;;  %2032 = vmatpush.msra.mxu0 %v1935_v4  ;;  %v1722_v51 = vor.u32 1.1754944e-38, %v1721_v18  ;;  %vm1720_vm9 = vcmp.eq.f32.partialorder %v1719_v41, 8.507059e+37  ;;  %v1601_v60 = vand.u32 2147483648, %v3431_v57 }
 0x722   : > { %v3434_v49 = vpop.eup %2505  ;;  %2055 = vmatpush.msrb.mxu1 %v1951_v7  ;;  %v1628_v37 = vmul.f32 %v1627_v26, %v3392_v52  ;;  %1984 = vmatpush.msra.mxu2 %v1905_v15  ;;  %v1578_v59 = vadd.f32 1.1283791, %v1577_v47  ;;  %v1599_v17 = vand.u32 2147483647, %v3431_v57  ;;  %v1553_v62 = vmul.f32 0.5, %v3346_v21 }
 0x723   : > { %v3436_v42 = vpop.eup %2507  ;;  %v1671_v2 = vmul.f32 %v3434_v49, %v3419_v22  ;;  %vm1676_vm3 = vweird.f32 %v3434_v49  ;;  %2007 = vmatpush.msrb.mxu3 %v1921_v16  ;;  %vm1595_vm11 = vweird.f32 %v3431_v57  ;;  %v1551_v18 = vmul.f32 0.5, %v3366_v28 }
 0x724   : > { %v1711_v9 = vmul.f32 %v3436_v42, %v3421_v24  ;;  %vm1716_vm4 = vweird.f32 %v3436_v42  ;;  %v3459_v48 = vadd.f32 1.0, %v1628_v37  ;;  %1985 = vmatpush.msra.mxu2 %v1904_v34  ;;  %vm1677_vm6 = vmor %vm1675_vm2, %vm1676_vm3  ;;  %v1616_v24 = vadd.f32 0.18741608, %v1615_v10 }
 0x725   : > { %v1672_v23 = vsub.f32 1.0, %v1671_v2  ;;  %2008 = vmatpush.msrb.mxu3 %v1920_v36  ;;  %vm1717_vm8 = vmor %vm1715_vm5, %vm1716_vm4  ;;  %v1554_v2 = vmul.f32 0.5, %v3350_v11  ;;  %v1579_v8 = vmul.f32 %v1578_v59, %v3377_v35  ;;  %vm1600_vm13 = vcmp.eq.f32.partialorder %v1599_v17, 8.507059e+37 }
 0x726   : > { %v1712_v33 = vsub.f32 1.0, %v1711_v9  ;;  %2511 = vrcp.f32 %v3459_v48  ;;  %1986 = vmatpush.msra.mxu2 %v1903_v43  ;;  %v1602_v9 = vor.u32 1.1754944e-38, %v1601_v60  ;;  %v1617_v10 = vmul.f32 %v1616_v24, %v3392_v52 }
 0x727   : > { %v1673_v38 = vmul.f32 %v3434_v49, %v1672_v23  ;;  %v2510_v45 = vpop.eup %2509  ;;  %2009 = vmatpush.msrb.mxu3 %v1919_v44  ;;  %vm1635_vm15 = vweird.f32 %v3459_v48 }
 0x728   : > { %v1713_v40 = vmul.f32 %v3436_v42, %v1712_v33  ;;  %v1591_v50 = vmul.f32 %v2510_v45, %v3431_v57  ;;  %vm1596_vm10 = vweird.f32 %v2510_v45  ;;  %v1618_v31 = vadd.f32 1.1283791, %v1617_v10 }
 0x729   : > { %v1674_v46 = vadd.f32 %v3434_v49, %v1673_v38  ;;  %vm1597_vm12 = vmor %vm1595_vm11, %vm1596_vm10  ;;  %v1641_v57 = vand.u32 2147483648, %v3459_v48  ;;  %v1639_v33 = vand.u32 2147483647, %v3459_v48 }
 0x72a   : > { %v1714_v0 = vadd.f32 %v3436_v42, %v1713_v40  ;;  %v1592_v55 = vsub.f32 1.0, %v1591_v50  ;;  %v1619_v44 = vmul.f32 %v1618_v31, %v3380_v1 }
 0x72b   : > { %v1678_v53 = vsel %vm1677_vm6, %v3434_v49, %v1674_v46  ;;  %v1642_v40 = vor.u32 1.1754944e-38, %v1641_v57  ;;  %vm1640_vm1 = vcmp.eq.f32.partialorder %v1639_v33, 8.507059e+37 }
 0x72c   : > { %v1683_v54 = vsel %vm1680_vm7, %v1682_v19, %v1678_v53  ;;  %v1718_v22 = vsel %vm1717_vm8, %v3436_v42, %v1714_v0  ;;  %v1593_v49 = vmul.f32 %v2510_v45, %v1592_v55  ;;  %v2512_v42 = vpop.eup %2511 }
 0x72d   : > { %v1684_v56 = vmul.f32 %v1683_v54, %v1659_v20  ;;  %v1723_v58 = vsel %vm1720_vm9, %v1722_v51, %v1718_v22  ;;  %v1631_v21 = vmul.f32 %v2512_v42, %v3459_v48  ;;  %vm1636_vm14 = vweird.f32 %v2512_v42 }
 0x72e   : > { %v1724_v61 = vmul.f32 %v1723_v58, %v1699_v39  ;;  %v1594_v4 = vadd.f32 %v2510_v45, %v1593_v49  ;;  %vm1637_vm0 = vmor %vm1635_vm15, %vm1636_vm14  ;;  %v1552_v51 = vmul.f32 0.5, %v3370_v29 }
 0x72f   : > { %v2295_v63 = vclamps-f32 %v1684_v56, 1.0  ;;  %v1632_v26 = vsub.f32 1.0, %v1631_v21 }
 0x730   : > { %v2296_v3 = vclamps-f32 %v1724_v61, 1.0  ;;  %v1598_v16 = vsel %vm1597_vm12, %v2510_v45, %v1594_v4 }
 0x731   : > { %v1889_v7 = vadd.f32 1.0, %v2295_v63  ;;  %v1603_v23 = vsel %vm1600_vm13, %v1602_v9, %v1598_v16  ;;  %v1633_v35 = vmul.f32 %v2512_v42, %v1632_v26 }
 0x732   : > { %v1890_v15 = vadd.f32 1.0, %v2296_v3  ;;  %v1604_v25 = vmul.f32 %v1603_v23, %v1579_v8 }
 0x733   : > { %v1897_v20 = vmul.f32 %v1889_v7, %v1553_v62  ;;  %v1634_v39 = vadd.f32 %v2512_v42, %v1633_v35 }
 0x734   : > { %v1898_v11 = vmul.f32 %v1890_v15, %v1554_v2  ;;  %v2293_v32 = vclamps-f32 %v1604_v25, 1.0 }
 0x735   : > { %2033 = vmatmul.f32.vlgmr.msra.gmra.mxu0 %v1897_v20  ;;  %v1638_v45 = vsel %vm1637_vm0, %v2512_v42, %v1634_v39 }
 0x736   : > { %2056 = vmatmul.f32.vlgmr.msrb.gmra.mxu1 %v1898_v11  ;;  %v1525_v52 = vpop.f32.mrf.mxu0  ;;  %v1548_v34 = vpop.f32.mrf.mxu1  ;;  %v1887_v37 = vadd.f32 1.0, %v2293_v32 }
 0x737   : > { %v3484_v36 = vadd.f32 %v1525_v52, %v1453_v5  ;;  %v3488_v38 = vadd.f32 %v1548_v34, %v1454_v6  ;;  %v1643_v6 = vsel %vm1640_vm1, %v1642_v40, %v1638_v45 }
 0x738   : > { %v1895_v5 = vmul.f32 %v1887_v37, %v1551_v18  ;;  %v1644_v19 = vmul.f32 %v1643_v6, %v1619_v44 }
 0x739   : > { %v3493_v41 = vmul.f32 0.70710677, %v3484_v36  ;;  %v3496_v43 = vmul.f32 0.70710677, %v3488_v38 }
 0x73a   : > { %1987 = vmatmul.f32.vlgmr.msra.gmra.mxu2 %v1895_v5  ;;  %v2294_v24 = vclamps-f32 %v1644_v19, 1.0 }
 0x73b   : > { %v1807_v28 = vmul.f32 %v3493_v41, %v3493_v41  ;;  %v1847_v46 = vmul.f32 %v3496_v43, %v3496_v43  ;;  %v1479_v47 = vpop.f32.mrf.mxu2  ;;  %v1502_v48 = vpop.f32.mrf.mxu3 }
 0x73c   : > { %v3505_v0 = vadd.f32 %v1479_v47, %v1451_v12  ;;  %v3509_v1 = vadd.f32 %v1502_v48, %v1452_v13  ;;  %v1888_v14 = vadd.f32 1.0, %v2294_v24 }
 0x73d   : > { %v3511_v50 = vmin.f32 %v1807_v28, 16.0  ;;  %v3513_v53 = vmin.f32 %v1847_v46, 16.0 }
 0x73e   : > { %v3517_v54 = vmul.f32 0.70710677, %v3505_v0  ;;  %v3522_v12 = vmul.f32 0.70710677, %v3509_v1  ;;  %v1896_v61 = vmul.f32 %v1888_v14, %v1552_v51 }
 0x73f   : > { %v1809_v22 = vmul.f32 2.1237322e-06, %v3511_v50  ;;  %v1849_v55 = vmul.f32 2.1237322e-06, %v3513_v53  ;;  %v1820_v56 = vmul.f32 3.8918573e-05, %v3511_v50 }
 0x740   : > { %v1727_v13 = vmul.f32 %v3517_v54, %v3517_v54  ;;  %v1860_v58 = vmul.f32 3.8918573e-05, %v3513_v53  ;;  %v1767_v60 = vmul.f32 %v3522_v12, %v3522_v12  ;;  %2010 = vmatmul.f32.vlgmr.msrb.gmra.mxu3 %v1896_v61 }
 0x741   : > { %v1810_v29 = vadd.f32 0.00028619796, %v1809_v22  ;;  %v1850_v59 = vadd.f32 0.00028619796, %v1849_v55  ;;  %v1821_v17 = vadd.f32 0.001143296, %v1820_v56 }
 0x742   : > { %v3530_v49 = vmin.f32 %v1727_v13, 16.0  ;;  %v1861_v62 = vadd.f32 0.001143296, %v1860_v58  ;;  %v3534_v3 = vmin.f32 %v1767_v60, 16.0 }
 0x743   : > { %v1811_v63 = vmul.f32 %v1810_v29, %v3511_v50  ;;  %v1851_v2 = vmul.f32 %v1850_v59, %v3513_v53  ;;  %v1822_v42 = vmul.f32 %v1821_v17, %v3511_v50 }
 0x744   : > { %v1729_v4 = vmul.f32 2.1237322e-06, %v3530_v49  ;;  %v1862_v7 = vmul.f32 %v1861_v62, %v3513_v53  ;;  %v1740_v8 = vmul.f32 3.8918573e-05, %v3530_v49  ;;  %v1769_v15 = vmul.f32 2.1237322e-06, %v3534_v3 }
 0x745   : > { %v1812_v9 = vadd.f32 0.0036580483, %v1811_v63  ;;  %v1852_v10 = vadd.f32 0.0036580483, %v1851_v2  ;;  %v1823_v21 = vadd.f32 0.014752088, %v1822_v42 }
 0x746   : > { %v1730_v16 = vadd.f32 0.00028619796, %v1729_v4  ;;  %v1863_v20 = vadd.f32 0.014752088, %v1862_v7  ;;  %v1741_v25 = vadd.f32 0.001143296, %v1740_v8 }
 0x747   : > { %v1813_v23 = vmul.f32 %v1812_v9, %v3511_v50  ;;  %v1853_v11 = vmul.f32 %v1852_v10, %v3513_v53  ;;  %v1770_v26 = vadd.f32 0.00028619796, %v1769_v15  ;;  %v1824_v31 = vmul.f32 %v1823_v21, %v3511_v50 }
 0x748   : > { %v1864_v57 = vmul.f32 %v1863_v20, %v3513_v53  ;;  %v1780_v32 = vmul.f32 3.8918573e-05, %v3534_v3  ;;  %v1731_v33 = vmul.f32 %v1730_v16, %v3530_v49  ;;  %v1742_v52 = vmul.f32 %v1741_v25, %v3530_v49 }
 0x749   : > { %v1814_v35 = vadd.f32 0.05243302, %v1813_v23  ;;  %v1854_v34 = vadd.f32 0.05243302, %v1853_v11  ;;  %v1825_v18 = vadd.f32 0.112945676, %v1824_v31  ;;  %v1771_v40 = vmul.f32 %v1770_v26, %v3534_v3 }
 0x74a   : > { %v1865_v37 = vadd.f32 0.112945676, %v1864_v57  ;;  %v1743_v39 = vadd.f32 0.014752088, %v1742_v52  ;;  %v1781_v45 = vadd.f32 0.001143296, %v1780_v32 }
 0x74b   : > { %v1826_v5 = vmul.f32 %v1825_v18, %v3511_v50  ;;  %v1815_v6 = vmul.f32 %v1814_v35, %v3511_v50  ;;  %v1732_v28 = vadd.f32 0.0036580483, %v1731_v33  ;;  %v1855_v47 = vmul.f32 %v1854_v34, %v3513_v53 }
 0x74c   : > { %v1866_v44 = vmul.f32 %v1865_v37, %v3513_v53  ;;  %v1744_v46 = vmul.f32 %v1743_v39, %v3530_v49  ;;  %v1782_v51 = vmul.f32 %v1781_v45, %v3534_v3  ;;  %v1772_v22 = vadd.f32 0.0036580483, %v1771_v40 }
 0x74d   : > { %v1827_v48 = vadd.f32 0.4994258, %v1826_v5  ;;  %v1816_v56 = vadd.f32 0.18741608, %v1815_v6  ;;  %v1733_v58 = vmul.f32 %v1732_v28, %v3530_v49  ;;  %v1856_v59 = vadd.f32 0.18741608, %v1855_v47 }
 0x74e   : > { %v1867_v19 = vadd.f32 0.4994258, %v1866_v44  ;;  %v1745_v24 = vadd.f32 0.112945676, %v1744_v46  ;;  %v1783_v13 = vadd.f32 0.014752088, %v1782_v51  ;;  %v1773_v63 = vmul.f32 %v1772_v22, %v3534_v3 }
 0x74f   : > { %v1828_v55 = vmul.f32 %v1827_v48, %v3511_v50  ;;  %v1817_v2 = vmul.f32 %v1816_v56, %v3511_v50  ;;  %v1734_v4 = vadd.f32 0.05243302, %v1733_v58  ;;  %v1857_v42 = vmul.f32 %v1856_v59, %v3513_v53 }
 0x750   : > { %v1868_v14 = vmul.f32 %v1867_v19, %v3513_v53  ;;  %v1746_v29 = vmul.f32 %v1745_v24, %v3530_v49  ;;  %v1784_v62 = vmul.f32 %v1783_v13, %v3534_v3  ;;  %v1774_v9 = vadd.f32 0.05243302, %v1773_v63 }
 0x751   : > { %v1829_v60 = vadd.f32 1.0, %v1828_v55  ;;  %v1818_v10 = vadd.f32 1.1283791, %v1817_v2  ;;  %v1735_v15 = vmul.f32 %v1734_v4, %v3530_v49  ;;  %v1858_v23 = vadd.f32 1.1283791, %v1857_v42 }
 0x752   : > { %v1869_v61 = vadd.f32 1.0, %v1868_v14  ;;  %v1747_v17 = vadd.f32 0.4994258, %v1746_v29  ;;  %v1785_v8 = vadd.f32 0.112945676, %v1784_v62  ;;  %v1775_v50 = vmul.f32 %v1774_v9, %v3534_v3 }
 0x753   : > { %2513 = vrcp.f32 %v1829_v60  ;;  %v1819_v26 = vmul.f32 %v1818_v10, %v3493_v41  ;;  %v1736_v31 = vadd.f32 0.18741608, %v1735_v15  ;;  %v1859_v35 = vmul.f32 %v1858_v23, %v3496_v43 }
 0x754   : > { %2515 = vrcp.f32 %v1869_v61  ;;  %v1748_v7 = vmul.f32 %v1747_v17, %v3530_v49  ;;  %v1786_v21 = vmul.f32 %v1785_v8, %v3534_v3  ;;  %v1839_v33 = vand.u32 2147483647, %v1829_v60 }
 0x755   : > { %v1841_v52 = vand.u32 2147483648, %v1829_v60  ;;  %v1881_v37 = vand.u32 2147483648, %v1869_v61  ;;  %v1776_v40 = vadd.f32 0.18741608, %v1775_v50  ;;  %v1879_v44 = vand.u32 2147483647, %v1869_v61 }
 0x756   : > { %v3565_v16 = vadd.f32 1.0, %v1748_v7  ;;  %v1787_v32 = vadd.f32 0.4994258, %v1786_v21  ;;  %v1737_v41 = vmul.f32 %v1736_v31, %v3530_v49  ;;  %vm1835_vm4 = vweird.f32 %v1829_v60 }
 0x757   : > { %v1842_v43 = vor.u32 1.1754944e-38, %v1841_v52  ;;  %vm1875_vm6 = vweird.f32 %v1869_v61  ;;  %vm1840_vm7 = vcmp.eq.f32.partialorder %v1839_v33, 8.507059e+37  ;;  %v1882_v19 = vor.u32 1.1754944e-38, %v1881_v37 }
 0x758   : > { %2517 = vrcp.f32 %v3565_v16  ;;  %v1788_v39 = vmul.f32 %v1787_v32, %v3534_v3  ;;  %vm1880_vm9 = vcmp.eq.f32.partialorder %v1879_v44, 8.507059e+37  ;;  %v1738_v55 = vadd.f32 1.1283791, %v1737_v41 }
 0x759   : > { %v2514_v20 = vpop.eup %2513  ;;  %v1761_v13 = vand.u32 2147483648, %v3565_v16  ;;  %v1759_v29 = vand.u32 2147483647, %v3565_v16  ;;  %v1557_v59 = vmul.f32 0.5, %v3484_v36  ;;  %vm1755_vm11 = vweird.f32 %v3565_v16 }
 0x75a   : > { %v2516_v11 = vpop.eup %2515  ;;  %v1831_v25 = vmul.f32 %v2514_v20, %v1829_v60  ;;  %vm1836_vm2 = vweird.f32 %v2514_v20  ;;  %v1789_v28 = vadd.f32 1.0, %v1788_v39  ;;  %v1739_v2 = vmul.f32 %v1738_v55, %v3517_v54 }
 0x75b   : > { %v1871_v53 = vmul.f32 %v2516_v11, %v1869_v61  ;;  %vm1876_vm3 = vweird.f32 %v2516_v11  ;;  %vm1837_vm5 = vmor %vm1835_vm4, %vm1836_vm2  ;;  %v1558_v61 = vmul.f32 0.5, %v3488_v38  ;;  %v1777_v4 = vmul.f32 %v1776_v40, %v3534_v3 }
 0x75c   : > { %v1832_v57 = vsub.f32 1.0, %v1831_v25  ;;  %vm1877_vm8 = vmor %vm1875_vm6, %vm1876_vm3  ;;  %2519 = vrcp.f32 %v1789_v28  ;;  %v1762_v7 = vor.u32 1.1754944e-38, %v1761_v13  ;;  %vm1760_vm13 = vcmp.eq.f32.partialorder %v1759_v29, 8.507059e+37 }
 0x75d   : > { %v1872_v34 = vsub.f32 1.0, %v1871_v53  ;;  %v1778_v23 = vadd.f32 1.1283791, %v1777_v4  ;;  %v1799_v3 = vand.u32 2147483647, %v1789_v28  ;;  %v1555_v25 = vmul.f32 0.5, %v3505_v0 }
 0x75e   : > { %v1833_v18 = vmul.f32 %v2514_v20, %v1832_v57  ;;  %v2518_v45 = vpop.eup %2517  ;;  %vm1795_vm15 = vweird.f32 %v1789_v28  ;;  %v2462_v0 = vld [vmem:[%s3662_s29] ss:$0 sm:$0xff] }
 0x75f   : > { %v1873_v5 = vmul.f32 %v2516_v11, %v1872_v34  ;;  %v1751_v47 = vmul.f32 %v2518_v45, %v3565_v16  ;;  %vm1756_vm10 = vweird.f32 %v2518_v45  ;;  %v1801_v16 = vand.u32 2147483648, %v1789_v28 }
 0x760   : > { %v1834_v6 = vadd.f32 %v2514_v20, %v1833_v18  ;;  %vm1757_vm12 = vmor %vm1755_vm11, %vm1756_vm10  ;;  %v1779_v31 = vmul.f32 %v1778_v23, %v3522_v12  ;;  %vm1800_vm1 = vcmp.eq.f32.partialorder %v1799_v3, 8.507059e+37  ;;  %v1556_v34 = vmul.f32 0.5, %v3509_v1 }
 0x761   : > { %v1874_v46 = vadd.f32 %v2516_v11, %v1873_v5  ;;  %v1752_v22 = vsub.f32 1.0, %v1751_v47 }
 0x762   : > { %v1838_v48 = vsel %vm1837_vm5, %v2514_v20, %v1834_v6  ;;  %v2520_v63 = vpop.eup %2519 }
 0x763   : > { %v1843_v51 = vsel %vm1840_vm7, %v1842_v43, %v1838_v48  ;;  %v1878_v24 = vsel %vm1877_vm8, %v2516_v11, %v1874_v46  ;;  %v1753_v58 = vmul.f32 %v2518_v45, %v1752_v22  ;;  %v1791_v10 = vmul.f32 %v2520_v63, %v1789_v28 }
 0x764   : > { %v1844_v49 = vmul.f32 %v1843_v51, %v1819_v26  ;;  %v1883_v14 = vsel %vm1880_vm9, %v1882_v19, %v1878_v24  ;;  %vm1796_vm14 = vweird.f32 %v2520_v63  ;;  %v1802_v26 = vor.u32 1.1754944e-38, %v1801_v16 }
 0x765   : > { %v1884_v56 = vmul.f32 %v1883_v14, %v1859_v35  ;;  %v1754_v62 = vadd.f32 %v2518_v45, %v1753_v58  ;;  %v1792_v20 = vsub.f32 1.0, %v1791_v10  ;;  %vm1797_vm0 = vmor %vm1795_vm15, %vm1796_vm14 }
 0x766   : > { %v2299_v60 = vclamps-f32 %v1844_v49, 1.0 }
 0x767   : > { %v2300_v17 = vclamps-f32 %v1884_v56, 1.0  ;;  %v1758_v9 = vsel %vm1757_vm12, %v2518_v45, %v1754_v62  ;;  %v1793_v54 = vmul.f32 %v2520_v63, %v1792_v20 }
 0x768   : > { %v1893_v42 = vadd.f32 1.0, %v2299_v60  ;;  %v1763_v15 = vsel %vm1760_vm13, %v1762_v7, %v1758_v9 }
 0x769   : > { %v1894_v8 = vadd.f32 1.0, %v2300_v17  ;;  %v1764_v38 = vmul.f32 %v1763_v15, %v1739_v2  ;;  %v1794_v53 = vadd.f32 %v2520_v63, %v1793_v54 }
 0x76a   : > { %v1901_v36 = vmul.f32 %v1893_v42, %v1557_v59 }
 0x76b   : > { %v1902_v21 = vmul.f32 %v1894_v8, %v1558_v61  ;;  %v2297_v11 = vclamps-f32 %v1764_v38, 1.0  ;;  %v1798_v32 = vsel %vm1797_vm0, %v2520_v63, %v1794_v53 }
 0x76c   : > { %2036 = vmatmul.f32.gmra.mxu0 %v1901_v36  ;;  %v1803_v35 = vsel %vm1800_vm1, %v1802_v26, %v1798_v32 }
 0x76d   : > { %2059 = vmatmul.f32.gmra.mxu1 %v1902_v21  ;;  %v1891_v50 = vadd.f32 1.0, %v2297_v11  ;;  %v1804_v33 = vmul.f32 %v1803_v35, %v1779_v31 }
 0x76f   : > { %v1899_v57 = vmul.f32 %v1891_v50, %v1555_v25  ;;  %v2298_v52 = vclamps-f32 %v1804_v33, 1.0 }
 0x771   : > { %1990 = vmatmul.f32.gmra.mxu2 %v1899_v57  ;;  %v1892_v18 = vadd.f32 1.0, %v2298_v52 }
 0x773   : > { %v1900_v37 = vmul.f32 %v1892_v18, %v1556_v34 }
 0x775   : > { %2013 = vmatmul.f32.gmra.mxu3 %v1900_v37 }
 0x7b2   : > { %v2034_v44 = vpop.f32.mrf.mxu0 }
 0x7b3   : > { %v2057_v41 = vpop.f32.mrf.mxu1 }
 0x7bd   : > { %v1988_v39 = vpop.f32.mrf.mxu2 }
 0x7be   : > { %v1989_v12 = vadd.f32 %v2462_v0, %v1988_v39 }
 0x7c3   : > { %v2011_v40 = vpop.f32.mrf.mxu3 }
 0x7c4   : > { %v2012_v5 = vadd.f32 %v2011_v40, %v1989_v12 }
 0x7c6   : > { %v2035_v45 = vadd.f32 %v2034_v44, %v2012_v5 }
 0x7c8   : > { %v2058_v6 = vadd.f32 %v2057_v41, %v2035_v45 }
 0x7ca   : > { %v2063_v28 = vadd.f32 %v2058_v6, %v3314_v27 }
 0x7cc   : > { %2065 = vst [vmem:[%s599_s5] sm:$0xff] %v2063_v28 }
 0x7e9   : > { %v2037_v48 = vpop.f32.mrf.mxu0 }
 0x7ea   : > { %v2060_v51 = vpop.f32.mrf.mxu1 }
 0x7f4   : > { %v1991_v1 = vpop.f32.mrf.mxu2 }
 0x7f5   : > { %v1992_v43 = vadd.f32 %v2462_v0, %v1991_v1 }
 0x7f8   : > { %v2014_v46 = vpop.f32.mrf.mxu3 }
 0x7f9   : > { %v2015_v47 = vadd.f32 %v2014_v46, %v1992_v43 }
 0x7fb   : > { %v2038_v19 = vadd.f32 %v2037_v48, %v2015_v47 }
 0x7fd   : > { %v2061_v27 = vadd.f32 %v2060_v51, %v2038_v19 }
 0x7ff   : > { %v2064_v24 = vadd.f32 %v2061_v27, %v3318_v30 }
 0x801   : > { %2066 = vst [vmem:[%s599_s5 + $0x8] sm:$0xff] %v2064_v24 }
 0x802   : > { %2848 = shalt.err (!%p2845_p9)
}
 0x803   : > { %s2928_s20 = smov 128   ;;  %s2929_s5 = smov 8  }
 0x804   : > { %2346 = dma.vmem_to_hbm [thread:$0]  (%p3112_p13), %s2081_s1, 256, %s2083_s21, %s2068_s2, %s2928_s20, %s2928_s20, %s2929_s5  }
 0x805 PF: > { %s2097_s16 = sand.u32 1, %s2895_s25   ;;  %p3664_p10 = scmp.ge.s32.totalorder %s2907_s28, 2 }
 0x806   : > { %s2098_s10 = scalar_lea.sflag [#allocation8], %s2097_s16 }
 0x807   : > { %p2381_p11 = pnand %p3664_p10, %p3117_p5 }
 0x809   : > { %p2382_p0 = pneg %p2381_p11 }
 0x80b   : > { %2890 = dma.done.wait (%p2382_p0), %s2098_s10, 256  }
 0x80c   : > { %2892 = vsyncadd (%p2382_p0), %s2098_s10, 4294967040  ;;  %p31_p2 = scmp.ge.s32.totalorder %s3092_s24, 4   ;;  %s3665_s25 = smov %s2899_s26 }
 0x80d   : > { %s3666_s26 = smov %s2903_s27  ;;  %s3667_s27 = smov %s3104_s30 }
 0x80e   : > { %s3668_s28 = smov %s3092_s24  ;;  %33 = sbr.rel (!%p31_p2) target bundleno = 18 (0x12), region = 162 }
 0x813   :  { %2104 = vsyncpa [#allocation7], 1 }
 0x814   :  { %2106 = vsyncpa [#allocation7 + $0x1], 1 }
 0x815   :  { %2107 = vsyncpa [#allocation10], 1 }
 0x816   :  { %2108 = vsyncpa [#allocation13], 1 }
 0x817   :  { %2109 = vsyncpa [#allocation16], 1 }
 0x818   :  { %2110 = vsyncpa [#allocation19], 1 }
 0x819   :  { %2111 = vsyncpa [#allocation22], 1 }
 0x81a   :  { %2112 = vsyncpa [#allocation8], 1 }
 0x81b   :  { %2114 = vsyncpa [#allocation8 + $0x1], 1 }

</bundles_post_ra>
